<compile_context>
chip_gen: v6e
topology: v6e:2x2x1
jax: 0.10.0
libtpu: 0.0.40
codegen_flags: <defaults>
</compile_context>

<pallas_src>
import functools
import math

import jax
import jax.numpy as jnp
from jax.experimental import pallas as pl
from jax.experimental.pallas import tpu as pltpu

RMS_EPS = 1.1920929e-07  # torch.finfo(float32).eps (PyTorch RMSNorm eps=None default)
ROPE_THETA = 10000.0     # rotary_embedding_torch default


def _vmem_limit_bytes():
    # Size the scoped VMEM limit against the *actual* chip (v7x has only 64 MiB
    # physical, v5e/v6e have 128 MiB); fall back to the compiler default.
    try:
        cap = pltpu.get_tpu_info().vmem_capacity_bytes
    except Exception:
        return None
    return int(min(96 * 1024 * 1024, cap * 3 // 4))


_VMEM_LIMIT = _vmem_limit_bytes()


def _vmem_budget():
    return (_VMEM_LIMIT or 64 * 1024 * 1024) - (4 << 20)   # leave headroom


def _choose_seq_tile(n):
    # Largest "nice" tile that divides the sequence length (falls back to n).
    # 256 first: fills the 256-wide MXU contraction on v6e/v7x and amortizes
    # per-grid-step overhead; still fine on v5e.
    for t in (256, 128, 64, 32, 16, 8):
        if n >= t and n % t == 0:
            return t
    return n  # TODO(synk): pad path for awkward (prime-ish) sequence lengths


def _choose_proj_row_tile(n, d_in, d_out):
    # Row tile for the projection kernels; budgeted so the resident weight
    # (conservatively assumed double-buffered), double-buffered f32 input rows
    # and bf16 output fit the scoped VMEM limit (matters on v7x's 64 MiB).
    budget = _vmem_budget()
    divisors = [t for t in (512, 256, 128, 64, 32, 16, 8) if t <= n and n % t == 0]
    if not divisors:
        return n
    for tm in divisors:
        need = 2 * d_in * d_out * 2 + 2 * tm * d_in * 4 + 2 * tm * d_out * 2
        if need <= budget:
            return tm
    return divisors[-1]  # TODO(synk): tile Dout as well for very large weights


def _choose_flat_row_tile(m, d_in, d_out, x_itemsize):
    budget = _vmem_budget()
    cands = [c for c in (1024, 512, 256, 128, 64, 32, 16, 8) if c <= m]
    if not cands:
        return m
    for tm in cands:
        need = 2 * d_in * d_out * 2 + 2 * tm * d_in * x_itemsize + 2 * tm * d_out * 4
        if need <= budget:
            return tm
    return cands[-1]


# ---------------------------------------------------------------------------
# Projection kernels
# ---------------------------------------------------------------------------
def _rmsnorm_proj_kernel(x_ref, w_ref, *rest, heads, dim_head, apply_rope):
    """Fused RMSNorm + Linear (+ optional RoPE) + head-split.

    x_ref: (1, tm, D) f32 input rows
    w_ref: (D, H*Dh) bf16 weight (gamma / scale / de-interleave pre-folded)
    cos/sin (if apply_rope): (tm, Dh//2) f32 rotary tables for these rows
    o_ref: (1, H, tm, Dh) bf16 output (head-split layout for the attention kernel)
    """
    if apply_rope:
        cos_ref, sin_ref, o_ref = rest
    else:
        (o_ref,) = rest

    x = x_ref[0].astype(jnp.float32)
    ms = jnp.mean(x * x, axis=-1, keepdims=True)
    xn = (x * jax.lax.rsqrt(ms + RMS_EPS)).astype(jnp.bfloat16)
    y = jnp.dot(xn, w_ref[...], preferred_element_type=jnp.float32)   # (tm, H*Dh)

    half = dim_head // 2
    if apply_rope:
        cos = cos_ref[...]
        sin = sin_ref[...]
    for h in range(heads):
        lo = h * dim_head
        yh = y[:, lo:lo + dim_head]
        if apply_rope:
            # De-interleaved rotary (features laid out [even..., odd...] per
            # head; the permutation was folded into Wq/Wk, so this matches the
            # interleaved reference formulation exactly).
            x1 = yh[:, :half]
            x2 = yh[:, half:]
            yh = jnp.concatenate([x1 * cos - x2 * sin, x2 * cos + x1 * sin], axis=-1)
        o_ref[0, h] = yh.astype(o_ref.dtype)   # once per element: cheap split


def _rmsnorm_project(x, w_t, *, heads, dim_head, cos=None, sin=None):
    B, N, D = x.shape
    Dout = heads * dim_head
    tm = _choose_proj_row_tile(N, D, Dout)
    apply_rope = cos is not None
    kernel = functools.partial(_rmsnorm_proj_kernel, heads=heads,
                               dim_head=dim_head, apply_rope=apply_rope)

    in_specs = [
        pl.BlockSpec((1, tm, D), lambda b, i: (b, i, 0)),
        pl.BlockSpec((D, Dout), lambda b, i: (0, 0)),        # weight VMEM-resident
    ]
    operands = [x, w_t]
    if apply_rope:
        half = dim_head // 2
        rope_spec = pl.BlockSpec((tm, half), lambda b, i: (i, 0))
        in_specs += [rope_spec, rope_spec]
        operands += [cos, sin]

    return pl.pallas_call(
        kernel,
        out_shape=jax.ShapeDtypeStruct((B, heads, N, dim_head), jnp.bfloat16),
        grid=(B, pl.cdiv(N, tm)),
        in_specs=in_specs,
        out_specs=pl.BlockSpec((1, heads, tm, dim_head), lambda b, i: (b, 0, i, 0)),
        compiler_params=pltpu.CompilerParams(
            dimension_semantics=("parallel", "parallel"),
            vmem_limit_bytes=_VMEM_LIMIT,
        ),
    )(*operands)


def _linear_kernel(x_ref, w_ref, o_ref):
    # x: (tm, Din), w: (Din, Dout) bf16 (pre-transposed)
    o_ref[...] = jnp.dot(x_ref[...].astype(jnp.bfloat16), w_ref[...],
                         preferred_element_type=jnp.float32).astype(o_ref.dtype)


def _tiled_matmul_call(x2d, w_t, out_dtype):
    M, Din = x2d.shape
    Dout = w_t.shape[1]
    tm = _choose_flat_row_tile(M, Din, Dout, x2d.dtype.itemsize)
    return pl.pallas_call(
        _linear_kernel,
        out_shape=jax.ShapeDtypeStruct((M, Dout), out_dtype),
        grid=(pl.cdiv(M, tm),),
        in_specs=[
            pl.BlockSpec((tm, Din), lambda i: (i, 0)),
            pl.BlockSpec((Din, Dout), lambda i: (0, 0)),      # weight VMEM-resident
        ],
        out_specs=pl.BlockSpec((tm, Dout), lambda i: (i, 0)),
        compiler_params=pltpu.CompilerParams(
            dimension_semantics=("parallel",),
            vmem_limit_bytes=_VMEM_LIMIT,
        ),
    )(x2d, w_t)


# ---------------------------------------------------------------------------
# Flash-style causal attention kernel (head-batched, lower-triangular grid)
# ---------------------------------------------------------------------------
def _flash_attention_kernel(qi_map_ref, ki_map_ref, q_ref, k_ref, v_ref, o_ref,
                            m_ref, l_ref, acc_ref, *, heads, block):
    step = pl.program_id(1)
    qi = qi_map_ref[step]
    ki = ki_map_ref[step]

    @pl.when(ki == 0)
    def _init():
        m_ref[...] = jnp.full(m_ref.shape, -jnp.inf, m_ref.dtype)
        l_ref[...] = jnp.zeros(l_ref.shape, l_ref.dtype)
        acc_ref[...] = jnp.zeros(acc_ref.shape, acc_ref.dtype)

    def attend(masked):
        # q/k/v tiles arrive pre-rotated (RoPE) and pre-scaled (1/sqrt(Dh)).
        q = q_ref[0]          # (H, t, Dh) bf16
        k = k_ref[0]
        v = v_ref[0]
        # s[h] = q[h] @ k[h]^T : head-batched bf16 MXU matmul, f32 accumulation
        s = jax.lax.dot_general(q, k, (((2,), (2,)), ((0,), (0,))),
                                preferred_element_type=jnp.float32)  # (H, t, t)
        if masked:
            row = jax.lax.broadcasted_iota(jnp.int32, (block, block), 0)
            col = jax.lax.broadcasted_iota(jnp.int32, (block, block), 1)
            s = jnp.where((row >= col)[None, :, :], s, -jnp.inf)
        m_prev = m_ref[...]
        m_new = jnp.maximum(m_prev, jnp.max(s, axis=-1, keepdims=True))
        alpha = jnp.exp(m_prev - m_new)
        p = jnp.exp(s - m_new)
        l_ref[...] = alpha * l_ref[...] + jnp.sum(p, axis=-1, keepdims=True)
        acc_ref[...] = alpha * acc_ref[...] + jax.lax.dot_general(
            p.astype(v.dtype), v, (((2,), (1,)), ((0,), (0,))),
            preferred_element_type=jnp.float32)
        m_ref[...] = m_new

    @pl.when(ki < qi)
    def _interior():                 # fully visible under the causal mask
        attend(masked=False)

    @pl.when(ki == qi)
    def _diagonal():                 # diagonal block: mask, then finalize
        attend(masked=True)
        inv_l = pl.reciprocal(l_ref[...], approx=False)   # exact, once per q tile
        out = acc_ref[...] * inv_l                        # (H, t, Dh) f32
        # Merge heads once and issue a single lane-dense (t, H*Dh) store.
        merged = jnp.concatenate([out[h] for h in range(heads)], axis=-1)
        o_ref[0] = merged.astype(o_ref.dtype)


def flash_attention(q, k, v, *, heads, dim_head):
    # q/k/v: (B, H, N, Dh) bf16, already rotated (q/k) and scaled (q).
    B, H, N, Dh = q.shape
    assert H == heads and Dh == dim_head
    t = _choose_seq_tile(N)
    nt = N // t

    # Flattened lower-triangular (qi, ki) enumeration: no grid steps are spent
    # on fully-masked upper-triangle blocks.
    qi_idx, ki_idx = [], []
    for qi in range(nt):
        for ki in range(qi + 1):
            qi_idx.append(qi)
            ki_idx.append(ki)
    qi_map = jnp.asarray(qi_idx, dtype=jnp.int32)
    ki_map = jnp.asarray(ki_idx, dtype=jnp.int32)
    n_steps = len(qi_idx)

    kernel = functools.partial(_flash_attention_kernel, heads=heads, block=t)

    grid_spec = pltpu.PrefetchScalarGridSpec(
        num_scalar_prefetch=2,
        grid=(B, n_steps),
        in_specs=[
            pl.BlockSpec((1, H, t, Dh), lambda b, s, qm, km: (b, 0, qm[s], 0)),
            pl.BlockSpec((1, H, t, Dh), lambda b, s, qm, km: (b, 0, km[s], 0)),
            pl.BlockSpec((1, H, t, Dh), lambda b, s, qm, km: (b, 0, km[s], 0)),
        ],
        out_specs=pl.BlockSpec((1, t, H * Dh), lambda b, s, qm, km: (b, qm[s], 0)),
        scratch_shapes=[
            pltpu.VMEM((H, t, 1), jnp.float32),    # running max
            pltpu.VMEM((H, t, 1), jnp.float32),    # running denominator
            pltpu.VMEM((H, t, Dh), jnp.float32),   # output accumulator
        ],
    )
    return pl.pallas_call(
        kernel,
        out_shape=jax.ShapeDtypeStruct((B, N, H * Dh), q.dtype),
        grid_spec=grid_spec,
        compiler_params=pltpu.CompilerParams(
            dimension_semantics=("parallel", "arbitrary"),
            vmem_limit_bytes=_VMEM_LIMIT,
        ),
    )(qi_map, ki_map, q, k, v)


# ---------------------------------------------------------------------------
# Parameters
# ---------------------------------------------------------------------------
def _deinterleave_rows(w, heads, dim_head):
    # Reorder rows within each head so rotary pairs (2i, 2i+1) map to
    # (i, i + dim_head//2).  Applied identically to Wq and Wk, so QK^T (and the
    # output) matches the interleaved reference formulation.
    idx = jnp.arange(heads * dim_head).reshape(heads, dim_head)
    perm = jnp.concatenate([idx[:, 0::2], idx[:, 1::2]], axis=-1).reshape(-1)
    return w[perm]


def init_attention_params(key, dim, dim_head=64, heads=8):
    dim_inner = heads * dim_head
    k1, k2, k3, k4 = jax.random.split(key, 4)
    bound_in = 1.0 / math.sqrt(dim)
    bound_inner = 1.0 / math.sqrt(dim_inner)
    return {
        "g_q": jnp.ones((dim,), jnp.float32),   # RMSNorm weights default to ones
        "g_k": jnp.ones((dim,), jnp.float32),
        "g_v": jnp.ones((dim,), jnp.float32),
        "w_q": jax.random.uniform(k1, (dim_inner, dim), jnp.float32, -bound_in, bound_in),
        "w_k": jax.random.uniform(k2, (dim_inner, dim), jnp.float32, -bound_in, bound_in),
        "w_v": jax.random.uniform(k3, (dim_inner, dim), jnp.float32, -bound_in, bound_in),
        "w_o": jax.random.uniform(k4, (dim, dim_inner), jnp.float32, -bound_inner, bound_inner),
    }


def prepare_attention_params(params, *, heads, dim_head):
    """One-time transforms (NOT repeated per forward call):
       * fold the rotary de-interleave permutation into Wq / Wk rows,
       * fold each RMSNorm gamma into the weight columns (W . diag(g)),
       * fold the 1/sqrt(dim_head) attention scale into Wq (rotation commutes
         with scalar scaling, so this is exact),
       * pre-transpose to (Din, Dout) so no in-kernel transpose is needed,
       * cast to bf16 (MXU operand dtype, halves weight DMA traffic)."""
    def fold(w, g, scale=1.0):
        return ((w * g[None, :]) * scale).T.astype(jnp.bfloat16)

    scale = 1.0 / math.sqrt(dim_head)
    w_q = _deinterleave_rows(params["w_q"], heads, dim_head)
    w_k = _deinterleave_rows(params["w_k"], heads, dim_head)
    return {
        "wq_t": fold(w_q, params["g_q"], scale),
        "wk_t": fold(w_k, params["g_k"]),
        "wv_t": fold(params["w_v"], params["g_v"]),
        "wo_t": params["w_o"].T.astype(jnp.bfloat16),
    }


# ---------------------------------------------------------------------------
# Forward
# ---------------------------------------------------------------------------
def attention_forward(prepared, q_input, k_input, v_input, *, heads, dim_head):
    B, N, D = q_input.shape
    dim_inner = heads * dim_head

    # rotary tables (q_len == k_len, so the cached-keys offset is 0)
    pos = jnp.arange(N, dtype=jnp.float32)
    inv_freq = 1.0 / (ROPE_THETA ** (jnp.arange(0, dim_head, 2, dtype=jnp.float32) / dim_head))
    angles = pos[:, None] * inv_freq[None, :]          # (N, Dh//2)
    cos, sin = jnp.cos(angles), jnp.sin(angles)

    # Fused RMSNorm + projection (+ RoPE for q/k) producing (B, H, N, Dh) bf16.
    # TODO(synk): add a fused [Wq|Wk|Wv] fast path for the self-attention case
    # (q_input is k_input is v_input) to cut activation HBM reads 3x.
    q = _rmsnorm_project(q_input, prepared["wq_t"], heads=heads, dim_head=dim_head,
                         cos=cos, sin=sin)
    k = _rmsnorm_project(k_input, prepared["wk_t"], heads=heads, dim_head=dim_head,
                         cos=cos, sin=sin)
    v = _rmsnorm_project(v_input, prepared["wv_t"], heads=heads, dim_head=dim_head)

    out = flash_attention(q, k, v, heads=heads, dim_head=dim_head)   # (B, N, H*Dh)

    out = _tiled_matmul_call(out.reshape(B * N, dim_inner), prepared["wo_t"],
                             q_input.dtype)
    return out.reshape(B, N, D)


# ---------------------------------------------------------------------------
# Pure-JAX reference (mirrors the PyTorch module, f32 end-to-end)
# ---------------------------------------------------------------------------
def _reference_forward(params, q_in, k_in, v_in, *, heads, dim_head):
    def rmsnorm(x, g):
        ms = jnp.mean(x * x, axis=-1, keepdims=True)
        return x * jax.lax.rsqrt(ms + RMS_EPS) * g

    q = rmsnorm(q_in, params["g_q"]) @ params["w_q"].T
    k = rmsnorm(k_in, params["g_k"]) @ params["w_k"].T
    v = rmsnorm(v_in, params["g_v"]) @ params["w_v"].T
    B, N, _ = q.shape

    def split(x):
        return x.reshape(B, N, heads, dim_head).transpose(0, 2, 1, 3)

    q, k, v = split(q), split(k), split(v)

    pos = jnp.arange(N, dtype=jnp.float32)
    inv = 1.0 / (ROPE_THETA ** (jnp.arange(0, dim_head, 2, dtype=jnp.float32) / dim_head))
    ang = pos[:, None] * inv[None, :]
    cos = jnp.repeat(jnp.cos(ang), 2, axis=-1)
    sin = jnp.repeat(jnp.sin(ang), 2, axis=-1)

    def rot_half(x):
        x1 = x[..., 0::2]
        x2 = x[..., 1::2]
        return jnp.stack([-x2, x1], axis=-1).reshape(x.shape)

    def rope(x):
        return x * cos + rot_half(x) * sin

    q, k = rope(q), rope(k)
    scale = 1.0 / math.sqrt(dim_head)
    s = jnp.einsum("bhqd,bhkd->bhqk", q, k) * scale
    mask = jnp.tril(jnp.ones((N, N), dtype=bool))
    s = jnp.where(mask, s, -jnp.inf)
    p = jax.nn.softmax(s, axis=-1)
    o = jnp.einsum("bhqk,bhkd->bhqd", p, v)
    o = o.transpose(0, 2, 1, 3).reshape(B, N, heads * dim_head)
    return o @ params["w_o"].T


if __name__ == "__main__":
    dim, dim_head, heads = 32, 16, 4
    B, N = 2, 8

    key = jax.random.PRNGKey(0)
    kp, kq, kk, kv = jax.random.split(key, 4)
    params = init_attention_params(kp, dim, dim_head=dim_head, heads=heads)
    prepared = prepare_attention_params(params, heads=heads, dim_head=dim_head)

    q_input = jax.random.normal(kq, (B, N, dim), jnp.float32)
    k_input = jax.random.normal(kk, (B, N, dim), jnp.float32)
    v_input = jax.random.normal(kv, (B, N, dim), jnp.float32)

    fwd = jax.jit(functools.partial(attention_forward, heads=heads, dim_head=dim_head))
    out = fwd(prepared, q_input, k_input, v_input)
    jax.block_until_ready(out)
    assert out.shape == (B, N, dim)
    assert bool(jnp.all(jnp.isfinite(out)))

    ref = _reference_forward(params, q_input, k_input, v_input,
                             heads=heads, dim_head=dim_head)
    max_err = float(jnp.max(jnp.abs(out - ref)))
    assert max_err < 5e-2, f"max abs error vs reference: {max_err}"
    print("KERNEL_OK")
</pallas_src>

<mosaic_0001>
module attributes {stable_mosaic.version = 11 : i64} {
  func.func @_rmsnorm_proj_kernel(%arg0: i32, %arg1: i32, %arg2: memref<1x8x32xf32, #tpu.memory_space<vmem>>, %arg3: memref<32x64xbf16, #tpu.memory_space<vmem>>, %arg4: memref<8x8xf32, #tpu.memory_space<vmem>>, %arg5: memref<8x8xf32, #tpu.memory_space<vmem>>, %arg6: memref<1x4x8x16xbf16, #tpu.memory_space<vmem>>) attributes {dimension_semantics = [#tpu.dimension_semantics<parallel>, #tpu.dimension_semantics<parallel>], iteration_bounds = array<i64: 2, 1>, scalar_prefetch = 0 : i64, scratch_operands = 0 : i64, tpu.core_type = #tpu.core_type<tc>, window_params = [{transform_indices = @transform_0, window_bounds = array<i64: 1, 8, 32>}, {pipeline_mode = #tpu.pipeline_mode<synchronous>, transform_indices = @transform_1, window_bounds = array<i64: 32, 64>}, {transform_indices = @transform_2, window_bounds = array<i64: 8, 8>}, {transform_indices = @transform_3, window_bounds = array<i64: 8, 8>}, {transform_indices = @transform_4, window_bounds = array<i64: 1, 4, 8, 16>}]} {
    %c0 = arith.constant 0 : index
    %c0_0 = arith.constant 0 : index
    %c0_1 = arith.constant 0 : index
    %0 = vector.load %arg2[%c0, %c0_0, %c0_1] : memref<1x8x32xf32, #tpu.memory_space<vmem>>, vector<1x8x32xf32>
    %1 = vector.shape_cast %0 : vector<1x8x32xf32> to vector<8x32xf32>
    %2 = arith.mulf %1, %1 : vector<8x32xf32>
    %cst = arith.constant dense<0.000000e+00> : vector<8xf32>
    %3 = vector.multi_reduction <add>, %2, %cst [1] : vector<8x32xf32> to vector<8xf32>
    %4 = vector.shape_cast %3 : vector<8xf32> to vector<8x1xf32>
    %cst_2 = arith.constant 3.200000e+01 : f32
    %5 = vector.broadcast %cst_2 : f32 to vector<8x1xf32>
    %6 = arith.divf %4, %5 : vector<8x1xf32>
    %cst_3 = arith.constant 1.1920929E-7 : f32
    %7 = vector.broadcast %cst_3 : f32 to vector<8x1xf32>
    %8 = arith.addf %6, %7 : vector<8x1xf32>
    %9 = math.rsqrt %8 : vector<8x1xf32>
    %10 = vector.broadcast %9 : vector<8x1xf32> to vector<8x32xf32>
    %11 = arith.mulf %1, %10 : vector<8x32xf32>
    %12 = arith.truncf %11 : vector<8x32xf32> to vector<8x32xbf16>
    %c0_4 = arith.constant 0 : index
    %c0_5 = arith.constant 0 : index
    %13 = vector.load %arg3[%c0_4, %c0_5] : memref<32x64xbf16, #tpu.memory_space<vmem>>, vector<32x64xbf16>
    %cst_6 = arith.constant dense<0.000000e+00> : vector<8x64xf32>
    %14 = tpu.matmul %12, %13, %cst_6 {dimension_numbers = #tpu.dot_dimension_numbers<[1], [0], [0], [1], [0, 0, 1, 1], [], []>} : vector<8x32xbf16>, vector<32x64xbf16>, vector<8x64xf32> -> vector<8x64xf32>
    %c0_7 = arith.constant 0 : index
    %c0_8 = arith.constant 0 : index
    %15 = vector.load %arg4[%c0_7, %c0_8] : memref<8x8xf32, #tpu.memory_space<vmem>>, vector<8x8xf32>
    %c0_9 = arith.constant 0 : index
    %c0_10 = arith.constant 0 : index
    %16 = vector.load %arg5[%c0_9, %c0_10] : memref<8x8xf32, #tpu.memory_space<vmem>>, vector<8x8xf32>
    %17 = vector.extract_strided_slice %14 {offsets = [0, 0], sizes = [8, 16], strides = [1, 1]} : vector<8x64xf32> to vector<8x16xf32>
    %18 = vector.extract_strided_slice %17 {offsets = [0, 0], sizes = [8, 8], strides = [1, 1]} : vector<8x16xf32> to vector<8x8xf32>
    %19 = vector.extract_strided_slice %17 {offsets = [0, 8], sizes = [8, 8], strides = [1, 1]} : vector<8x16xf32> to vector<8x8xf32>
    %20 = arith.mulf %18, %15 : vector<8x8xf32>
    %21 = arith.mulf %19, %16 : vector<8x8xf32>
    %22 = arith.subf %20, %21 : vector<8x8xf32>
    %23 = arith.mulf %19, %15 : vector<8x8xf32>
    %24 = arith.mulf %18, %16 : vector<8x8xf32>
    %25 = arith.addf %23, %24 : vector<8x8xf32>
    %26 = tpu.concatenate %22, %25 in 1 : vector<8x8xf32>, vector<8x8xf32> -> vector<8x16xf32>
    %27 = arith.truncf %26 : vector<8x16xf32> to vector<8x16xbf16>
    %c0_11 = arith.constant 0 : index
    %c0_12 = arith.constant 0 : index
    %c0_13 = arith.constant 0 : index
    %c0_14 = arith.constant 0 : index
    %28 = vector.load %arg6[%c0_11, %c0_12, %c0_13, %c0_14] : memref<1x4x8x16xbf16, #tpu.memory_space<vmem>>, vector<1x1x8x16xbf16>
    %29 = vector.shape_cast %28 : vector<1x1x8x16xbf16> to vector<8x16xbf16>
    %30 = vector.shape_cast %27 : vector<8x16xbf16> to vector<1x1x8x16xbf16>
    tpu.vector_store %arg6[%c0_11, %c0_12, %c0_13, %c0_14], %30 {strides = array<i32>} : memref<1x4x8x16xbf16, #tpu.memory_space<vmem>>, vector<1x1x8x16xbf16>,
    %31 = vector.extract_strided_slice %14 {offsets = [0, 16], sizes = [8, 16], strides = [1, 1]} : vector<8x64xf32> to vector<8x16xf32>
    %32 = vector.extract_strided_slice %31 {offsets = [0, 0], sizes = [8, 8], strides = [1, 1]} : vector<8x16xf32> to vector<8x8xf32>
    %33 = vector.extract_strided_slice %31 {offsets = [0, 8], sizes = [8, 8], strides = [1, 1]} : vector<8x16xf32> to vector<8x8xf32>
    %34 = arith.mulf %32, %15 : vector<8x8xf32>
    %35 = arith.mulf %33, %16 : vector<8x8xf32>
    %36 = arith.subf %34, %35 : vector<8x8xf32>
    %37 = arith.mulf %33, %15 : vector<8x8xf32>
    %38 = arith.mulf %32, %16 : vector<8x8xf32>
    %39 = arith.addf %37, %38 : vector<8x8xf32>
    %40 = tpu.concatenate %36, %39 in 1 : vector<8x8xf32>, vector<8x8xf32> -> vector<8x16xf32>
    %41 = arith.truncf %40 : vector<8x16xf32> to vector<8x16xbf16>
    %c0_15 = arith.constant 0 : index
    %c1 = arith.constant 1 : index
    %c0_16 = arith.constant 0 : index
    %c0_17 = arith.constant 0 : index
    %42 = vector.load %arg6[%c0_15, %c1, %c0_16, %c0_17] : memref<1x4x8x16xbf16, #tpu.memory_space<vmem>>, vector<1x1x8x16xbf16>
    %43 = vector.shape_cast %42 : vector<1x1x8x16xbf16> to vector<8x16xbf16>
    %44 = vector.shape_cast %41 : vector<8x16xbf16> to vector<1x1x8x16xbf16>
    tpu.vector_store %arg6[%c0_15, %c1, %c0_16, %c0_17], %44 {strides = array<i32>} : memref<1x4x8x16xbf16, #tpu.memory_space<vmem>>, vector<1x1x8x16xbf16>,
    %45 = vector.extract_strided_slice %14 {offsets = [0, 32], sizes = [8, 16], strides = [1, 1]} : vector<8x64xf32> to vector<8x16xf32>
    %46 = vector.extract_strided_slice %45 {offsets = [0, 0], sizes = [8, 8], strides = [1, 1]} : vector<8x16xf32> to vector<8x8xf32>
    %47 = vector.extract_strided_slice %45 {offsets = [0, 8], sizes = [8, 8], strides = [1, 1]} : vector<8x16xf32> to vector<8x8xf32>
    %48 = arith.mulf %46, %15 : vector<8x8xf32>
    %49 = arith.mulf %47, %16 : vector<8x8xf32>
    %50 = arith.subf %48, %49 : vector<8x8xf32>
    %51 = arith.mulf %47, %15 : vector<8x8xf32>
    %52 = arith.mulf %46, %16 : vector<8x8xf32>
    %53 = arith.addf %51, %52 : vector<8x8xf32>
    %54 = tpu.concatenate %50, %53 in 1 : vector<8x8xf32>, vector<8x8xf32> -> vector<8x16xf32>
    %55 = arith.truncf %54 : vector<8x16xf32> to vector<8x16xbf16>
    %c0_18 = arith.constant 0 : index
    %c2 = arith.constant 2 : index
    %c0_19 = arith.constant 0 : index
    %c0_20 = arith.constant 0 : index
    %56 = vector.load %arg6[%c0_18, %c2, %c0_19, %c0_20] : memref<1x4x8x16xbf16, #tpu.memory_space<vmem>>, vector<1x1x8x16xbf16>
    %57 = vector.shape_cast %56 : vector<1x1x8x16xbf16> to vector<8x16xbf16>
    %58 = vector.shape_cast %55 : vector<8x16xbf16> to vector<1x1x8x16xbf16>
    tpu.vector_store %arg6[%c0_18, %c2, %c0_19, %c0_20], %58 {strides = array<i32>} : memref<1x4x8x16xbf16, #tpu.memory_space<vmem>>, vector<1x1x8x16xbf16>,
    %59 = vector.extract_strided_slice %14 {offsets = [0, 48], sizes = [8, 16], strides = [1, 1]} : vector<8x64xf32> to vector<8x16xf32>
    %60 = vector.extract_strided_slice %59 {offsets = [0, 0], sizes = [8, 8], strides = [1, 1]} : vector<8x16xf32> to vector<8x8xf32>
    %61 = vector.extract_strided_slice %59 {offsets = [0, 8], sizes = [8, 8], strides = [1, 1]} : vector<8x16xf32> to vector<8x8xf32>
    %62 = arith.mulf %60, %15 : vector<8x8xf32>
    %63 = arith.mulf %61, %16 : vector<8x8xf32>
    %64 = arith.subf %62, %63 : vector<8x8xf32>
    %65 = arith.mulf %61, %15 : vector<8x8xf32>
    %66 = arith.mulf %60, %16 : vector<8x8xf32>
    %67 = arith.addf %65, %66 : vector<8x8xf32>
    %68 = tpu.concatenate %64, %67 in 1 : vector<8x8xf32>, vector<8x8xf32> -> vector<8x16xf32>
    %69 = arith.truncf %68 : vector<8x16xf32> to vector<8x16xbf16>
    %c0_21 = arith.constant 0 : index
    %c3 = arith.constant 3 : index
    %c0_22 = arith.constant 0 : index
    %c0_23 = arith.constant 0 : index
    %70 = vector.load %arg6[%c0_21, %c3, %c0_22, %c0_23] : memref<1x4x8x16xbf16, #tpu.memory_space<vmem>>, vector<1x1x8x16xbf16>
    %71 = vector.shape_cast %70 : vector<1x1x8x16xbf16> to vector<8x16xbf16>
    %72 = vector.shape_cast %69 : vector<8x16xbf16> to vector<1x1x8x16xbf16>
    tpu.vector_store %arg6[%c0_21, %c3, %c0_22, %c0_23], %72 {strides = array<i32>} : memref<1x4x8x16xbf16, #tpu.memory_space<vmem>>, vector<1x1x8x16xbf16>,
    return
  }
  func.func @transform_0(%arg0: i32, %arg1: i32) -> (i32, i32, i32) {
    %c0_i32 = arith.constant 0 : i32
    %c0_i32_0 = arith.constant 0 : i32
    return %arg0, %arg1, %c0_i32 : i32, i32, i32
  }
  func.func @transform_1(%arg0: i32, %arg1: i32) -> (i32, i32) {
    %c0_i32 = arith.constant 0 : i32
    %c0_i32_0 = arith.constant 0 : i32
    %c0_i32_1 = arith.constant 0 : i32
    return %c0_i32, %c0_i32_0 : i32, i32
  }
  func.func @transform_2(%arg0: i32, %arg1: i32) -> (i32, i32) {
    %c0_i32 = arith.constant 0 : i32
    %c0_i32_0 = arith.constant 0 : i32
    return %arg1, %c0_i32 : i32, i32
  }
  func.func @transform_3(%arg0: i32, %arg1: i32) -> (i32, i32) {
    %c0_i32 = arith.constant 0 : i32
    %c0_i32_0 = arith.constant 0 : i32
    return %arg1, %c0_i32 : i32, i32
  }
  func.func @transform_4(%arg0: i32, %arg1: i32) -> (i32, i32, i32, i32) {
    %c0_i32 = arith.constant 0 : i32
    %c0_i32_0 = arith.constant 0 : i32
    %c0_i32_1 = arith.constant 0 : i32
    return %arg0, %c0_i32, %arg1, %c0_i32_0 : i32, i32, i32, i32
  }
}

module attributes {stable_mosaic.version = 11 : i64} {
  func.func @_rmsnorm_proj_kernel(%arg0: i32, %arg1: i32, %arg2: memref<1x8x32xf32, #tpu.memory_space<vmem>>, %arg3: memref<32x64xbf16, #tpu.memory_space<vmem>>, %arg4: memref<8x8xf32, #tpu.memory_space<vmem>>, %arg5: memref<8x8xf32, #tpu.memory_space<vmem>>, %arg6: memref<1x4x8x16xbf16, #tpu.memory_space<vmem>>) attributes {dimension_semantics = [#tpu.dimension_semantics<parallel>, #tpu.dimension_semantics<parallel>], iteration_bounds = array<i64: 2, 1>, scalar_prefetch = 0 : i64, scratch_operands = 0 : i64, tpu.core_type = #tpu.core_type<tc>, window_params = [{transform_indices = @transform_0, window_bounds = array<i64: 1, 8, 32>}, {pipeline_mode = #tpu.pipeline_mode<synchronous>, transform_indices = @transform_1, window_bounds = array<i64: 32, 64>}, {transform_indices = @transform_2, window_bounds = array<i64: 8, 8>}, {transform_indices = @transform_3, window_bounds = array<i64: 8, 8>}, {transform_indices = @transform_4, window_bounds = array<i64: 1, 4, 8, 16>}]} {
    %c0 = arith.constant 0 : index
    %c0_0 = arith.constant 0 : index
    %c0_1 = arith.constant 0 : index
    %0 = vector.load %arg2[%c0, %c0_0, %c0_1] : memref<1x8x32xf32, #tpu.memory_space<vmem>>, vector<1x8x32xf32>
    %1 = vector.shape_cast %0 : vector<1x8x32xf32> to vector<8x32xf32>
    %2 = arith.mulf %1, %1 : vector<8x32xf32>
    %cst = arith.constant dense<0.000000e+00> : vector<8xf32>
    %3 = vector.multi_reduction <add>, %2, %cst [1] : vector<8x32xf32> to vector<8xf32>
    %4 = vector.shape_cast %3 : vector<8xf32> to vector<8x1xf32>
    %cst_2 = arith.constant 3.200000e+01 : f32
    %5 = vector.broadcast %cst_2 : f32 to vector<8x1xf32>
    %6 = arith.divf %4, %5 : vector<8x1xf32>
    %cst_3 = arith.constant 1.1920929E-7 : f32
    %7 = vector.broadcast %cst_3 : f32 to vector<8x1xf32>
    %8 = arith.addf %6, %7 : vector<8x1xf32>
    %9 = math.rsqrt %8 : vector<8x1xf32>
    %10 = vector.broadcast %9 : vector<8x1xf32> to vector<8x32xf32>
    %11 = arith.mulf %1, %10 : vector<8x32xf32>
    %12 = arith.truncf %11 : vector<8x32xf32> to vector<8x32xbf16>
    %c0_4 = arith.constant 0 : index
    %c0_5 = arith.constant 0 : index
    %13 = vector.load %arg3[%c0_4, %c0_5] : memref<32x64xbf16, #tpu.memory_space<vmem>>, vector<32x64xbf16>
    %cst_6 = arith.constant dense<0.000000e+00> : vector<8x64xf32>
    %14 = tpu.matmul %12, %13, %cst_6 {dimension_numbers = #tpu.dot_dimension_numbers<[1], [0], [0], [1], [0, 0, 1, 1], [], []>} : vector<8x32xbf16>, vector<32x64xbf16>, vector<8x64xf32> -> vector<8x64xf32>
    %c0_7 = arith.constant 0 : index
    %c0_8 = arith.constant 0 : index
    %15 = vector.load %arg4[%c0_7, %c0_8] : memref<8x8xf32, #tpu.memory_space<vmem>>, vector<8x8xf32>
    %c0_9 = arith.constant 0 : index
    %c0_10 = arith.constant 0 : index
    %16 = vector.load %arg5[%c0_9, %c0_10] : memref<8x8xf32, #tpu.memory_space<vmem>>, vector<8x8xf32>
    %17 = vector.extract_strided_slice %14 {offsets = [0, 0], sizes = [8, 16], strides = [1, 1]} : vector<8x64xf32> to vector<8x16xf32>
    %18 = vector.extract_strided_slice %17 {offsets = [0, 0], sizes = [8, 8], strides = [1, 1]} : vector<8x16xf32> to vector<8x8xf32>
    %19 = vector.extract_strided_slice %17 {offsets = [0, 8], sizes = [8, 8], strides = [1, 1]} : vector<8x16xf32> to vector<8x8xf32>
    %20 = arith.mulf %18, %15 : vector<8x8xf32>
    %21 = arith.mulf %19, %16 : vector<8x8xf32>
    %22 = arith.subf %20, %21 : vector<8x8xf32>
    %23 = arith.mulf %19, %15 : vector<8x8xf32>
    %24 = arith.mulf %18, %16 : vector<8x8xf32>
    %25 = arith.addf %23, %24 : vector<8x8xf32>
    %26 = tpu.concatenate %22, %25 in 1 : vector<8x8xf32>, vector<8x8xf32> -> vector<8x16xf32>
    %27 = arith.truncf %26 : vector<8x16xf32> to vector<8x16xbf16>
    %c0_11 = arith.constant 0 : index
    %c0_12 = arith.constant 0 : index
    %c0_13 = arith.constant 0 : index
    %c0_14 = arith.constant 0 : index
    %28 = vector.load %arg6[%c0_11, %c0_12, %c0_13, %c0_14] : memref<1x4x8x16xbf16, #tpu.memory_space<vmem>>, vector<1x1x8x16xbf16>
    %29 = vector.shape_cast %28 : vector<1x1x8x16xbf16> to vector<8x16xbf16>
    %30 = vector.shape_cast %27 : vector<8x16xbf16> to vector<1x1x8x16xbf16>
    tpu.vector_store %arg6[%c0_11, %c0_12, %c0_13, %c0_14], %30 {strides = array<i32>} : memref<1x4x8x16xbf16, #tpu.memory_space<vmem>>, vector<1x1x8x16xbf16>,
    %31 = vector.extract_strided_slice %14 {offsets = [0, 16], sizes = [8, 16], strides = [1, 1]} : vector<8x64xf32> to vector<8x16xf32>
    %32 = vector.extract_strided_slice %31 {offsets = [0, 0], sizes = [8, 8], strides = [1, 1]} : vector<8x16xf32> to vector<8x8xf32>
    %33 = vector.extract_strided_slice %31 {offsets = [0, 8], sizes = [8, 8], strides = [1, 1]} : vector<8x16xf32> to vector<8x8xf32>
    %34 = arith.mulf %32, %15 : vector<8x8xf32>
    %35 = arith.mulf %33, %16 : vector<8x8xf32>
    %36 = arith.subf %34, %35 : vector<8x8xf32>
    %37 = arith.mulf %33, %15 : vector<8x8xf32>
    %38 = arith.mulf %32, %16 : vector<8x8xf32>
    %39 = arith.addf %37, %38 : vector<8x8xf32>
    %40 = tpu.concatenate %36, %39 in 1 : vector<8x8xf32>, vector<8x8xf32> -> vector<8x16xf32>
    %41 = arith.truncf %40 : vector<8x16xf32> to vector<8x16xbf16>
    %c0_15 = arith.constant 0 : index
    %c1 = arith.constant 1 : index
    %c0_16 = arith.constant 0 : index
    %c0_17 = arith.constant 0 : index
    %42 = vector.load %arg6[%c0_15, %c1, %c0_16, %c0_17] : memref<1x4x8x16xbf16, #tpu.memory_space<vmem>>, vector<1x1x8x16xbf16>
    %43 = vector.shape_cast %42 : vector<1x1x8x16xbf16> to vector<8x16xbf16>
    %44 = vector.shape_cast %41 : vector<8x16xbf16> to vector<1x1x8x16xbf16>
    tpu.vector_store %arg6[%c0_15, %c1, %c0_16, %c0_17], %44 {strides = array<i32>} : memref<1x4x8x16xbf16, #tpu.memory_space<vmem>>, vector<1x1x8x16xbf16>,
    %45 = vector.extract_strided_slice %14 {offsets = [0, 32], sizes = [8, 16], strides = [1, 1]} : vector<8x64xf32> to vector<8x16xf32>
    %46 = vector.extract_strided_slice %45 {offsets = [0, 0], sizes = [8, 8], strides = [1, 1]} : vector<8x16xf32> to vector<8x8xf32>
    %47 = vector.extract_strided_slice %45 {offsets = [0, 8], sizes = [8, 8], strides = [1, 1]} : vector<8x16xf32> to vector<8x8xf32>
    %48 = arith.mulf %46, %15 : vector<8x8xf32>
    %49 = arith.mulf %47, %16 : vector<8x8xf32>
    %50 = arith.subf %48, %49 : vector<8x8xf32>
    %51 = arith.mulf %47, %15 : vector<8x8xf32>
    %52 = arith.mulf %46, %16 : vector<8x8xf32>
    %53 = arith.addf %51, %52 : vector<8x8xf32>
    %54 = tpu.concatenate %50, %53 in 1 : vector<8x8xf32>, vector<8x8xf32> -> vector<8x16xf32>
    %55 = arith.truncf %54 : vector<8x16xf32> to vector<8x16xbf16>
    %c0_18 = arith.constant 0 : index
    %c2 = arith.constant 2 : index
    %c0_19 = arith.constant 0 : index
    %c0_20 = arith.constant 0 : index
    %56 = vector.load %arg6[%c0_18, %c2, %c0_19, %c0_20] : memref<1x4x8x16xbf16, #tpu.memory_space<vmem>>, vector<1x1x8x16xbf16>
    %57 = vector.shape_cast %56 : vector<1x1x8x16xbf16> to vector<8x16xbf16>
    %58 = vector.shape_cast %55 : vector<8x16xbf16> to vector<1x1x8x16xbf16>
    tpu.vector_store %arg6[%c0_18, %c2, %c0_19, %c0_20], %58 {strides = array<i32>} : memref<1x4x8x16xbf16, #tpu.memory_space<vmem>>, vector<1x1x8x16xbf16>,
    %59 = vector.extract_strided_slice %14 {offsets = [0, 48], sizes = [8, 16], strides = [1, 1]} : vector<8x64xf32> to vector<8x16xf32>
    %60 = vector.extract_strided_slice %59 {offsets = [0, 0], sizes = [8, 8], strides = [1, 1]} : vector<8x16xf32> to vector<8x8xf32>
    %61 = vector.extract_strided_slice %59 {offsets = [0, 8], sizes = [8, 8], strides = [1, 1]} : vector<8x16xf32> to vector<8x8xf32>
    %62 = arith.mulf %60, %15 : vector<8x8xf32>
    %63 = arith.mulf %61, %16 : vector<8x8xf32>
    %64 = arith.subf %62, %63 : vector<8x8xf32>
    %65 = arith.mulf %61, %15 : vector<8x8xf32>
    %66 = arith.mulf %60, %16 : vector<8x8xf32>
    %67 = arith.addf %65, %66 : vector<8x8xf32>
    %68 = tpu.concatenate %64, %67 in 1 : vector<8x8xf32>, vector<8x8xf32> -> vector<8x16xf32>
    %69 = arith.truncf %68 : vector<8x16xf32> to vector<8x16xbf16>
    %c0_21 = arith.constant 0 : index
    %c3 = arith.constant 3 : index
    %c0_22 = arith.constant 0 : index
    %c0_23 = arith.constant 0 : index
    %70 = vector.load %arg6[%c0_21, %c3, %c0_22, %c0_23] : memref<1x4x8x16xbf16, #tpu.memory_space<vmem>>, vector<1x1x8x16xbf16>
    %71 = vector.shape_cast %70 : vector<1x1x8x16xbf16> to vector<8x16xbf16>
    %72 = vector.shape_cast %69 : vector<8x16xbf16> to vector<1x1x8x16xbf16>
    tpu.vector_store %arg6[%c0_21, %c3, %c0_22, %c0_23], %72 {strides = array<i32>} : memref<1x4x8x16xbf16, #tpu.memory_space<vmem>>, vector<1x1x8x16xbf16>,
    return
  }
  func.func @transform_0(%arg0: i32, %arg1: i32) -> (i32, i32, i32) {
    %c0_i32 = arith.constant 0 : i32
    %c0_i32_0 = arith.constant 0 : i32
    return %arg0, %arg1, %c0_i32 : i32, i32, i32
  }
  func.func @transform_1(%arg0: i32, %arg1: i32) -> (i32, i32) {
    %c0_i32 = arith.constant 0 : i32
    %c0_i32_0 = arith.constant 0 : i32
    %c0_i32_1 = arith.constant 0 : i32
    return %c0_i32, %c0_i32_0 : i32, i32
  }
  func.func @transform_2(%arg0: i32, %arg1: i32) -> (i32, i32) {
    %c0_i32 = arith.constant 0 : i32
    %c0_i32_0 = arith.constant 0 : i32
    return %arg1, %c0_i32 : i32, i32
  }
  func.func @transform_3(%arg0: i32, %arg1: i32) -> (i32, i32) {
    %c0_i32 = arith.constant 0 : i32
    %c0_i32_0 = arith.constant 0 : i32
    return %arg1, %c0_i32 : i32, i32
  }
  func.func @transform_4(%arg0: i32, %arg1: i32) -> (i32, i32, i32, i32) {
    %c0_i32 = arith.constant 0 : i32
    %c0_i32_0 = arith.constant 0 : i32
    %c0_i32_1 = arith.constant 0 : i32
    return %arg0, %c0_i32, %arg1, %c0_i32_0 : i32, i32, i32, i32
  }
}

module attributes {stable_mosaic.version = 11 : i64} {
  func.func @_rmsnorm_proj_kernel(%arg0: i32, %arg1: i32, %arg2: memref<1x8x32xf32, #tpu.memory_space<vmem>>, %arg3: memref<32x64xbf16, #tpu.memory_space<vmem>>, %arg4: memref<1x4x8x16xbf16, #tpu.memory_space<vmem>>) attributes {dimension_semantics = [#tpu.dimension_semantics<parallel>, #tpu.dimension_semantics<parallel>], iteration_bounds = array<i64: 2, 1>, scalar_prefetch = 0 : i64, scratch_operands = 0 : i64, tpu.core_type = #tpu.core_type<tc>, window_params = [{transform_indices = @transform_0, window_bounds = array<i64: 1, 8, 32>}, {pipeline_mode = #tpu.pipeline_mode<synchronous>, transform_indices = @transform_1, window_bounds = array<i64: 32, 64>}, {transform_indices = @transform_2, window_bounds = array<i64: 1, 4, 8, 16>}]} {
    %c0 = arith.constant 0 : index
    %c0_0 = arith.constant 0 : index
    %c0_1 = arith.constant 0 : index
    %0 = vector.load %arg2[%c0, %c0_0, %c0_1] : memref<1x8x32xf32, #tpu.memory_space<vmem>>, vector<1x8x32xf32>
    %1 = vector.shape_cast %0 : vector<1x8x32xf32> to vector<8x32xf32>
    %2 = arith.mulf %1, %1 : vector<8x32xf32>
    %cst = arith.constant dense<0.000000e+00> : vector<8xf32>
    %3 = vector.multi_reduction <add>, %2, %cst [1] : vector<8x32xf32> to vector<8xf32>
    %4 = vector.shape_cast %3 : vector<8xf32> to vector<8x1xf32>
    %cst_2 = arith.constant 3.200000e+01 : f32
    %5 = vector.broadcast %cst_2 : f32 to vector<8x1xf32>
    %6 = arith.divf %4, %5 : vector<8x1xf32>
    %cst_3 = arith.constant 1.1920929E-7 : f32
    %7 = vector.broadcast %cst_3 : f32 to vector<8x1xf32>
    %8 = arith.addf %6, %7 : vector<8x1xf32>
    %9 = math.rsqrt %8 : vector<8x1xf32>
    %10 = vector.broadcast %9 : vector<8x1xf32> to vector<8x32xf32>
    %11 = arith.mulf %1, %10 : vector<8x32xf32>
    %12 = arith.truncf %11 : vector<8x32xf32> to vector<8x32xbf16>
    %c0_4 = arith.constant 0 : index
    %c0_5 = arith.constant 0 : index
    %13 = vector.load %arg3[%c0_4, %c0_5] : memref<32x64xbf16, #tpu.memory_space<vmem>>, vector<32x64xbf16>
    %cst_6 = arith.constant dense<0.000000e+00> : vector<8x64xf32>
    %14 = tpu.matmul %12, %13, %cst_6 {dimension_numbers = #tpu.dot_dimension_numbers<[1], [0], [0], [1], [0, 0, 1, 1], [], []>} : vector<8x32xbf16>, vector<32x64xbf16>, vector<8x64xf32> -> vector<8x64xf32>
    %15 = vector.extract_strided_slice %14 {offsets = [0, 0], sizes = [8, 16], strides = [1, 1]} : vector<8x64xf32> to vector<8x16xf32>
    %16 = arith.truncf %15 : vector<8x16xf32> to vector<8x16xbf16>
    %c0_7 = arith.constant 0 : index
    %c0_8 = arith.constant 0 : index
    %c0_9 = arith.constant 0 : index
    %c0_10 = arith.constant 0 : index
    %17 = vector.load %arg4[%c0_7, %c0_8, %c0_9, %c0_10] : memref<1x4x8x16xbf16, #tpu.memory_space<vmem>>, vector<1x1x8x16xbf16>
    %18 = vector.shape_cast %17 : vector<1x1x8x16xbf16> to vector<8x16xbf16>
    %19 = vector.shape_cast %16 : vector<8x16xbf16> to vector<1x1x8x16xbf16>
    tpu.vector_store %arg4[%c0_7, %c0_8, %c0_9, %c0_10], %19 {strides = array<i32>} : memref<1x4x8x16xbf16, #tpu.memory_space<vmem>>, vector<1x1x8x16xbf16>,
    %20 = vector.extract_strided_slice %14 {offsets = [0, 16], sizes = [8, 16], strides = [1, 1]} : vector<8x64xf32> to vector<8x16xf32>
    %21 = arith.truncf %20 : vector<8x16xf32> to vector<8x16xbf16>
    %c0_11 = arith.constant 0 : index
    %c1 = arith.constant 1 : index
    %c0_12 = arith.constant 0 : index
    %c0_13 = arith.constant 0 : index
    %22 = vector.load %arg4[%c0_11, %c1, %c0_12, %c0_13] : memref<1x4x8x16xbf16, #tpu.memory_space<vmem>>, vector<1x1x8x16xbf16>
    %23 = vector.shape_cast %22 : vector<1x1x8x16xbf16> to vector<8x16xbf16>
    %24 = vector.shape_cast %21 : vector<8x16xbf16> to vector<1x1x8x16xbf16>
    tpu.vector_store %arg4[%c0_11, %c1, %c0_12, %c0_13], %24 {strides = array<i32>} : memref<1x4x8x16xbf16, #tpu.memory_space<vmem>>, vector<1x1x8x16xbf16>,
    %25 = vector.extract_strided_slice %14 {offsets = [0, 32], sizes = [8, 16], strides = [1, 1]} : vector<8x64xf32> to vector<8x16xf32>
    %26 = arith.truncf %25 : vector<8x16xf32> to vector<8x16xbf16>
    %c0_14 = arith.constant 0 : index
    %c2 = arith.constant 2 : index
    %c0_15 = arith.constant 0 : index
    %c0_16 = arith.constant 0 : index
    %27 = vector.load %arg4[%c0_14, %c2, %c0_15, %c0_16] : memref<1x4x8x16xbf16, #tpu.memory_space<vmem>>, vector<1x1x8x16xbf16>
    %28 = vector.shape_cast %27 : vector<1x1x8x16xbf16> to vector<8x16xbf16>
    %29 = vector.shape_cast %26 : vector<8x16xbf16> to vector<1x1x8x16xbf16>
    tpu.vector_store %arg4[%c0_14, %c2, %c0_15, %c0_16], %29 {strides = array<i32>} : memref<1x4x8x16xbf16, #tpu.memory_space<vmem>>, vector<1x1x8x16xbf16>,
    %30 = vector.extract_strided_slice %14 {offsets = [0, 48], sizes = [8, 16], strides = [1, 1]} : vector<8x64xf32> to vector<8x16xf32>
    %31 = arith.truncf %30 : vector<8x16xf32> to vector<8x16xbf16>
    %c0_17 = arith.constant 0 : index
    %c3 = arith.constant 3 : index
    %c0_18 = arith.constant 0 : index
    %c0_19 = arith.constant 0 : index
    %32 = vector.load %arg4[%c0_17, %c3, %c0_18, %c0_19] : memref<1x4x8x16xbf16, #tpu.memory_space<vmem>>, vector<1x1x8x16xbf16>
    %33 = vector.shape_cast %32 : vector<1x1x8x16xbf16> to vector<8x16xbf16>
    %34 = vector.shape_cast %31 : vector<8x16xbf16> to vector<1x1x8x16xbf16>
    tpu.vector_store %arg4[%c0_17, %c3, %c0_18, %c0_19], %34 {strides = array<i32>} : memref<1x4x8x16xbf16, #tpu.memory_space<vmem>>, vector<1x1x8x16xbf16>,
    return
  }
  func.func @transform_0(%arg0: i32, %arg1: i32) -> (i32, i32, i32) {
    %c0_i32 = arith.constant 0 : i32
    %c0_i32_0 = arith.constant 0 : i32
    return %arg0, %arg1, %c0_i32 : i32, i32, i32
  }
  func.func @transform_1(%arg0: i32, %arg1: i32) -> (i32, i32) {
    %c0_i32 = arith.constant 0 : i32
    %c0_i32_0 = arith.constant 0 : i32
    %c0_i32_1 = arith.constant 0 : i32
    return %c0_i32, %c0_i32_0 : i32, i32
  }
  func.func @transform_2(%arg0: i32, %arg1: i32) -> (i32, i32, i32, i32) {
    %c0_i32 = arith.constant 0 : i32
    %c0_i32_0 = arith.constant 0 : i32
    %c0_i32_1 = arith.constant 0 : i32
    return %arg0, %c0_i32, %arg1, %c0_i32_0 : i32, i32, i32, i32
  }
}

module attributes {stable_mosaic.version = 11 : i64} {
  func.func @_flash_attention_kernel(%arg0: i32, %arg1: i32, %arg2: memref<1xi32, #tpu.memory_space<smem>>, %arg3: memref<1xi32, #tpu.memory_space<smem>>, %arg4: memref<1x4x8x16xbf16, #tpu.memory_space<vmem>>, %arg5: memref<1x4x8x16xbf16, #tpu.memory_space<vmem>>, %arg6: memref<1x4x8x16xbf16, #tpu.memory_space<vmem>>, %arg7: memref<1x8x64xbf16, #tpu.memory_space<vmem>>, %arg8: memref<4x8x1xf32, #tpu.memory_space<vmem>>, %arg9: memref<4x8x1xf32, #tpu.memory_space<vmem>>, %arg10: memref<4x8x16xf32, #tpu.memory_space<vmem>>) attributes {dimension_semantics = [#tpu.dimension_semantics<parallel>, #tpu.dimension_semantics<arbitrary>], iteration_bounds = array<i64: 2, 1>, scalar_prefetch = 2 : i64, scratch_operands = 3 : i64, tpu.core_type = #tpu.core_type<tc>, window_params = [{transform_indices = @transform_0, window_bounds = array<i64: 1, 4, 8, 16>}, {transform_indices = @transform_1, window_bounds = array<i64: 1, 4, 8, 16>}, {transform_indices = @transform_2, window_bounds = array<i64: 1, 4, 8, 16>}, {transform_indices = @transform_3, window_bounds = array<i64: 1, 8, 64>}]} {
    %0 = arith.index_cast %arg1 : i32 to index
    %1 = memref.load %arg2[%0] : memref<1xi32, #tpu.memory_space<smem>>
    %2 = arith.index_cast %arg1 : i32 to index
    %3 = memref.load %arg3[%2] : memref<1xi32, #tpu.memory_space<smem>>
    %c0_i32 = arith.constant 0 : i32
    %4 = arith.cmpi eq, %3, %c0_i32 : i32
    %5 = arith.extui %4 : i1 to i32
    %c0_i32_0 = arith.constant 0 : i32
    %6 = arith.cmpi ne, %5, %c0_i32_0 : i32
    scf.if %6 {
      %cst = arith.constant 0xFF800000 : f32
      %13 = vector.broadcast %cst : f32 to vector<4x8x1xf32>
      %c0 = arith.constant 0 : index
      %c0_3 = arith.constant 0 : index
      %c0_4 = arith.constant 0 : index
      %14 = vector.load %arg8[%c0, %c0_3, %c0_4] : memref<4x8x1xf32, #tpu.memory_space<vmem>>, vector<4x8x1xf32>
      tpu.vector_store %arg8[%c0, %c0_3, %c0_4], %13 {strides = array<i32>} : memref<4x8x1xf32, #tpu.memory_space<vmem>>, vector<4x8x1xf32>,
      %cst_5 = arith.constant 0.000000e+00 : f32
      %15 = vector.broadcast %cst_5 : f32 to vector<4x8x1xf32>
      %c0_6 = arith.constant 0 : index
      %c0_7 = arith.constant 0 : index
      %c0_8 = arith.constant 0 : index
      %16 = vector.load %arg9[%c0_6, %c0_7, %c0_8] : memref<4x8x1xf32, #tpu.memory_space<vmem>>, vector<4x8x1xf32>
      tpu.vector_store %arg9[%c0_6, %c0_7, %c0_8], %15 {strides = array<i32>} : memref<4x8x1xf32, #tpu.memory_space<vmem>>, vector<4x8x1xf32>,
      %cst_9 = arith.constant 0.000000e+00 : f32
      %17 = vector.broadcast %cst_9 : f32 to vector<4x8x16xf32>
      %c0_10 = arith.constant 0 : index
      %c0_11 = arith.constant 0 : index
      %c0_12 = arith.constant 0 : index
      %18 = vector.load %arg10[%c0_10, %c0_11, %c0_12] : memref<4x8x16xf32, #tpu.memory_space<vmem>>, vector<4x8x16xf32>
      tpu.vector_store %arg10[%c0_10, %c0_11, %c0_12], %17 {strides = array<i32>} : memref<4x8x16xf32, #tpu.memory_space<vmem>>, vector<4x8x16xf32>,
    } else {
    }
    %7 = arith.cmpi slt, %3, %1 : i32
    %8 = arith.extui %7 : i1 to i32
    %c0_i32_1 = arith.constant 0 : i32
    %9 = arith.cmpi ne, %8, %c0_i32_1 : i32
    scf.if %9 {
      %c0 = arith.constant 0 : index
      %c0_3 = arith.constant 0 : index
      %c0_4 = arith.constant 0 : index
      %c0_5 = arith.constant 0 : index
      %13 = vector.load %arg4[%c0, %c0_3, %c0_4, %c0_5] : memref<1x4x8x16xbf16, #tpu.memory_space<vmem>>, vector<1x4x8x16xbf16>
      %14 = vector.shape_cast %13 : vector<1x4x8x16xbf16> to vector<4x8x16xbf16>
      %c0_6 = arith.constant 0 : index
      %c0_7 = arith.constant 0 : index
      %c0_8 = arith.constant 0 : index
      %c0_9 = arith.constant 0 : index
      %15 = vector.load %arg5[%c0_6, %c0_7, %c0_8, %c0_9] : memref<1x4x8x16xbf16, #tpu.memory_space<vmem>>, vector<1x4x8x16xbf16>
      %16 = vector.shape_cast %15 : vector<1x4x8x16xbf16> to vector<4x8x16xbf16>
      %c0_10 = arith.constant 0 : index
      %c0_11 = arith.constant 0 : index
      %c0_12 = arith.constant 0 : index
      %c0_13 = arith.constant 0 : index
      %17 = vector.load %arg6[%c0_10, %c0_11, %c0_12, %c0_13] : memref<1x4x8x16xbf16, #tpu.memory_space<vmem>>, vector<1x4x8x16xbf16>
      %18 = vector.shape_cast %17 : vector<1x4x8x16xbf16> to vector<4x8x16xbf16>
      %cst = arith.constant dense<0.000000e+00> : vector<4x8x8xf32>
      %19 = tpu.matmul %14, %16, %cst {dimension_numbers = #tpu.dot_dimension_numbers<[2], [2], [1], [1], [0, 0, 0, 1, 1, 1], [0], [0]>} : vector<4x8x16xbf16>, vector<4x8x16xbf16>, vector<4x8x8xf32> -> vector<4x8x8xf32>
      %c0_14 = arith.constant 0 : index
      %c0_15 = arith.constant 0 : index
      %c0_16 = arith.constant 0 : index
      %20 = vector.load %arg8[%c0_14, %c0_15, %c0_16] : memref<4x8x1xf32, #tpu.memory_space<vmem>>, vector<4x8x1xf32>
      %cst_17 = arith.constant dense<0xFF800000> : vector<4x8xf32>
      %21 = vector.multi_reduction <maximumf>, %19, %cst_17 [2] : vector<4x8x8xf32> to vector<4x8xf32>
      %22 = vector.shape_cast %21 : vector<4x8xf32> to vector<4x8x1xf32>
      %23 = arith.maximumf %20, %22 : vector<4x8x1xf32>
      %24 = arith.subf %20, %23 : vector<4x8x1xf32>
      %25 = math.exp %24 : vector<4x8x1xf32>
      %26 = vector.broadcast %23 : vector<4x8x1xf32> to vector<4x8x8xf32>
      %27 = arith.subf %19, %26 : vector<4x8x8xf32>
      %28 = math.exp %27 : vector<4x8x8xf32>
      %c0_18 = arith.constant 0 : index
      %c0_19 = arith.constant 0 : index
      %c0_20 = arith.constant 0 : index
      %29 = vector.load %arg9[%c0_18, %c0_19, %c0_20] : memref<4x8x1xf32, #tpu.memory_space<vmem>>, vector<4x8x1xf32>
      %30 = arith.mulf %25, %29 : vector<4x8x1xf32>
      %cst_21 = arith.constant dense<0.000000e+00> : vector<4x8xf32>
      %31 = vector.multi_reduction <add>, %28, %cst_21 [2] : vector<4x8x8xf32> to vector<4x8xf32>
      %32 = vector.shape_cast %31 : vector<4x8xf32> to vector<4x8x1xf32>
      %33 = arith.addf %30, %32 : vector<4x8x1xf32>
      %c0_22 = arith.constant 0 : index
      %c0_23 = arith.constant 0 : index
      %c0_24 = arith.constant 0 : index
      %34 = vector.load %arg9[%c0_22, %c0_23, %c0_24] : memref<4x8x1xf32, #tpu.memory_space<vmem>>, vector<4x8x1xf32>
      tpu.vector_store %arg9[%c0_22, %c0_23, %c0_24], %33 {strides = array<i32>} : memref<4x8x1xf32, #tpu.memory_space<vmem>>, vector<4x8x1xf32>,
      %c0_25 = arith.constant 0 : index
      %c0_26 = arith.constant 0 : index
      %c0_27 = arith.constant 0 : index
      %35 = vector.load %arg10[%c0_25, %c0_26, %c0_27] : memref<4x8x16xf32, #tpu.memory_space<vmem>>, vector<4x8x16xf32>
      %36 = vector.broadcast %25 : vector<4x8x1xf32> to vector<4x8x16xf32>
      %37 = arith.mulf %36, %35 : vector<4x8x16xf32>
      %38 = arith.truncf %28 : vector<4x8x8xf32> to vector<4x8x8xbf16>
      %cst_28 = arith.constant dense<0.000000e+00> : vector<4x8x16xf32>
      %39 = tpu.matmul %38, %18, %cst_28 {dimension_numbers = #tpu.dot_dimension_numbers<[2], [1], [1], [2], [0, 0, 0, 1, 1, 2], [0], [0]>} : vector<4x8x8xbf16>, vector<4x8x16xbf16>, vector<4x8x16xf32> -> vector<4x8x16xf32>
      %40 = arith.addf %37, %39 : vector<4x8x16xf32>
      %c0_29 = arith.constant 0 : index
      %c0_30 = arith.constant 0 : index
      %c0_31 = arith.constant 0 : index
      %41 = vector.load %arg10[%c0_29, %c0_30, %c0_31] : memref<4x8x16xf32, #tpu.memory_space<vmem>>, vector<4x8x16xf32>
      tpu.vector_store %arg10[%c0_29, %c0_30, %c0_31], %40 {strides = array<i32>} : memref<4x8x16xf32, #tpu.memory_space<vmem>>, vector<4x8x16xf32>,
      %c0_32 = arith.constant 0 : index
      %c0_33 = arith.constant 0 : index
      %c0_34 = arith.constant 0 : index
      %42 = vector.load %arg8[%c0_32, %c0_33, %c0_34] : memref<4x8x1xf32, #tpu.memory_space<vmem>>, vector<4x8x1xf32>
      tpu.vector_store %arg8[%c0_32, %c0_33, %c0_34], %23 {strides = array<i32>} : memref<4x8x1xf32, #tpu.memory_space<vmem>>, vector<4x8x1xf32>,
    } else {
    }
    %10 = arith.cmpi eq, %3, %1 : i32
    %11 = arith.extui %10 : i1 to i32
    %c0_i32_2 = arith.constant 0 : i32
    %12 = arith.cmpi ne, %11, %c0_i32_2 : i32
    scf.if %12 {
      %c0 = arith.constant 0 : index
      %c0_3 = arith.constant 0 : index
      %c0_4 = arith.constant 0 : index
      %c0_5 = arith.constant 0 : index
      %13 = vector.load %arg4[%c0, %c0_3, %c0_4, %c0_5] : memref<1x4x8x16xbf16, #tpu.memory_space<vmem>>, vector<1x4x8x16xbf16>
      %14 = vector.shape_cast %13 : vector<1x4x8x16xbf16> to vector<4x8x16xbf16>
      %c0_6 = arith.constant 0 : index
      %c0_7 = arith.constant 0 : index
      %c0_8 = arith.constant 0 : index
      %c0_9 = arith.constant 0 : index
      %15 = vector.load %arg5[%c0_6, %c0_7, %c0_8, %c0_9] : memref<1x4x8x16xbf16, #tpu.memory_space<vmem>>, vector<1x4x8x16xbf16>
      %16 = vector.shape_cast %15 : vector<1x4x8x16xbf16> to vector<4x8x16xbf16>
      %c0_10 = arith.constant 0 : index
      %c0_11 = arith.constant 0 : index
      %c0_12 = arith.constant 0 : index
      %c0_13 = arith.constant 0 : index
      %17 = vector.load %arg6[%c0_10, %c0_11, %c0_12, %c0_13] : memref<1x4x8x16xbf16, #tpu.memory_space<vmem>>, vector<1x4x8x16xbf16>
      %18 = vector.shape_cast %17 : vector<1x4x8x16xbf16> to vector<4x8x16xbf16>
      %cst = arith.constant dense<0.000000e+00> : vector<4x8x8xf32>
      %19 = tpu.matmul %14, %16, %cst {dimension_numbers = #tpu.dot_dimension_numbers<[2], [2], [1], [1], [0, 0, 0, 1, 1, 1], [0], [0]>} : vector<4x8x16xbf16>, vector<4x8x16xbf16>, vector<4x8x8xf32> -> vector<4x8x8xf32>
      %20 = tpu.iota {dimensions = array<i32: 0>} : vector<8x8xi32>
      %21 = tpu.iota {dimensions = array<i32: 1>} : vector<8x8xi32>
      %22 = arith.cmpi sge, %20, %21 : vector<8x8xi32>
      %23 = vector.shape_cast %22 : vector<8x8xi1> to vector<1x8x8xi1>
      %cst_14 = arith.constant 0xFF800000 : f32
      %24 = vector.shape_cast %23 : vector<1x8x8xi1> to vector<1x8x8xi1>
      %25 = vector.broadcast %24 : vector<1x8x8xi1> to vector<4x8x8xi1>
      %26 = vector.broadcast %cst_14 : f32 to vector<4x8x8xf32>
      %27 = arith.select %25, %19, %26 : vector<4x8x8xi1>, vector<4x8x8xf32>
      %c0_15 = arith.constant 0 : index
      %c0_16 = arith.constant 0 : index
      %c0_17 = arith.constant 0 : index
      %28 = vector.load %arg8[%c0_15, %c0_16, %c0_17] : memref<4x8x1xf32, #tpu.memory_space<vmem>>, vector<4x8x1xf32>
      %cst_18 = arith.constant dense<0xFF800000> : vector<4x8xf32>
      %29 = vector.multi_reduction <maximumf>, %27, %cst_18 [2] : vector<4x8x8xf32> to vector<4x8xf32>
      %30 = vector.shape_cast %29 : vector<4x8xf32> to vector<4x8x1xf32>
      %31 = arith.maximumf %28, %30 : vector<4x8x1xf32>
      %32 = arith.subf %28, %31 : vector<4x8x1xf32>
      %33 = math.exp %32 : vector<4x8x1xf32>
      %34 = vector.broadcast %31 : vector<4x8x1xf32> to vector<4x8x8xf32>
      %35 = arith.subf %27, %34 : vector<4x8x8xf32>
      %36 = math.exp %35 : vector<4x8x8xf32>
      %c0_19 = arith.constant 0 : index
      %c0_20 = arith.constant 0 : index
      %c0_21 = arith.constant 0 : index
      %37 = vector.load %arg9[%c0_19, %c0_20, %c0_21] : memref<4x8x1xf32, #tpu.memory_space<vmem>>, vector<4x8x1xf32>
      %38 = arith.mulf %33, %37 : vector<4x8x1xf32>
      %cst_22 = arith.constant dense<0.000000e+00> : vector<4x8xf32>
      %39 = vector.multi_reduction <add>, %36, %cst_22 [2] : vector<4x8x8xf32> to vector<4x8xf32>
      %40 = vector.shape_cast %39 : vector<4x8xf32> to vector<4x8x1xf32>
      %41 = arith.addf %38, %40 : vector<4x8x1xf32>
      %c0_23 = arith.constant 0 : index
      %c0_24 = arith.constant 0 : index
      %c0_25 = arith.constant 0 : index
      %42 = vector.load %arg9[%c0_23, %c0_24, %c0_25] : memref<4x8x1xf32, #tpu.memory_space<vmem>>, vector<4x8x1xf32>
      tpu.vector_store %arg9[%c0_23, %c0_24, %c0_25], %41 {strides = array<i32>} : memref<4x8x1xf32, #tpu.memory_space<vmem>>, vector<4x8x1xf32>,
      %c0_26 = arith.constant 0 : index
      %c0_27 = arith.constant 0 : index
      %c0_28 = arith.constant 0 : index
      %43 = vector.load %arg10[%c0_26, %c0_27, %c0_28] : memref<4x8x16xf32, #tpu.memory_space<vmem>>, vector<4x8x16xf32>
      %44 = vector.broadcast %33 : vector<4x8x1xf32> to vector<4x8x16xf32>
      %45 = arith.mulf %44, %43 : vector<4x8x16xf32>
      %46 = arith.truncf %36 : vector<4x8x8xf32> to vector<4x8x8xbf16>
      %cst_29 = arith.constant dense<0.000000e+00> : vector<4x8x16xf32>
      %47 = tpu.matmul %46, %18, %cst_29 {dimension_numbers = #tpu.dot_dimension_numbers<[2], [1], [1], [2], [0, 0, 0, 1, 1, 2], [0], [0]>} : vector<4x8x8xbf16>, vector<4x8x16xbf16>, vector<4x8x16xf32> -> vector<4x8x16xf32>
      %48 = arith.addf %45, %47 : vector<4x8x16xf32>
      %c0_30 = arith.constant 0 : index
      %c0_31 = arith.constant 0 : index
      %c0_32 = arith.constant 0 : index
      %49 = vector.load %arg10[%c0_30, %c0_31, %c0_32] : memref<4x8x16xf32, #tpu.memory_space<vmem>>, vector<4x8x16xf32>
      tpu.vector_store %arg10[%c0_30, %c0_31, %c0_32], %48 {strides = array<i32>} : memref<4x8x16xf32, #tpu.memory_space<vmem>>, vector<4x8x16xf32>,
      %c0_33 = arith.constant 0 : index
      %c0_34 = arith.constant 0 : index
      %c0_35 = arith.constant 0 : index
      %50 = vector.load %arg8[%c0_33, %c0_34, %c0_35] : memref<4x8x1xf32, #tpu.memory_space<vmem>>, vector<4x8x1xf32>
      tpu.vector_store %arg8[%c0_33, %c0_34, %c0_35], %31 {strides = array<i32>} : memref<4x8x1xf32, #tpu.memory_space<vmem>>, vector<4x8x1xf32>,
      %c0_36 = arith.constant 0 : index
      %c0_37 = arith.constant 0 : index
      %c0_38 = arith.constant 0 : index
      %51 = vector.load %arg9[%c0_36, %c0_37, %c0_38] : memref<4x8x1xf32, #tpu.memory_space<vmem>>, vector<4x8x1xf32>
      %52 = tpu.reciprocal %51 : vector<4x8x1xf32> -> vector<4x8x1xf32>
      %c0_39 = arith.constant 0 : index
      %c0_40 = arith.constant 0 : index
      %c0_41 = arith.constant 0 : index
      %53 = vector.load %arg10[%c0_39, %c0_40, %c0_41] : memref<4x8x16xf32, #tpu.memory_space<vmem>>, vector<4x8x16xf32>
      %54 = vector.broadcast %52 : vector<4x8x1xf32> to vector<4x8x16xf32>
      %55 = arith.mulf %53, %54 : vector<4x8x16xf32>
      %56 = vector.extract_strided_slice %55 {offsets = [0, 0, 0], sizes = [1, 8, 16], strides = [1, 1, 1]} : vector<4x8x16xf32> to vector<1x8x16xf32>
      %57 = vector.shape_cast %56 : vector<1x8x16xf32> to vector<8x16xf32>
      %58 = vector.extract_strided_slice %55 {offsets = [1, 0, 0], sizes = [1, 8, 16], strides = [1, 1, 1]} : vector<4x8x16xf32> to vector<1x8x16xf32>
      %59 = vector.shape_cast %58 : vector<1x8x16xf32> to vector<8x16xf32>
      %60 = vector.extract_strided_slice %55 {offsets = [2, 0, 0], sizes = [1, 8, 16], strides = [1, 1, 1]} : vector<4x8x16xf32> to vector<1x8x16xf32>
      %61 = vector.shape_cast %60 : vector<1x8x16xf32> to vector<8x16xf32>
      %62 = vector.extract_strided_slice %55 {offsets = [3, 0, 0], sizes = [1, 8, 16], strides = [1, 1, 1]} : vector<4x8x16xf32> to vector<1x8x16xf32>
      %63 = vector.shape_cast %62 : vector<1x8x16xf32> to vector<8x16xf32>
      %64 = tpu.concatenate %57, %59, %61, %63 in 1 : vector<8x16xf32>, vector<8x16xf32>, vector<8x16xf32>, vector<8x16xf32> -> vector<8x64xf32>
      %65 = arith.truncf %64 : vector<8x64xf32> to vector<8x64xbf16>
      %c0_42 = arith.constant 0 : index
      %c0_43 = arith.constant 0 : index
      %c0_44 = arith.constant 0 : index
      %66 = vector.load %arg7[%c0_42, %c0_43, %c0_44] : memref<1x8x64xbf16, #tpu.memory_space<vmem>>, vector<1x8x64xbf16>
      %67 = vector.shape_cast %66 : vector<1x8x64xbf16> to vector<8x64xbf16>
      %68 = vector.shape_cast %65 : vector<8x64xbf16> to vector<1x8x64xbf16>
      tpu.vector_store %arg7[%c0_42, %c0_43, %c0_44], %68 {strides = array<i32>} : memref<1x8x64xbf16, #tpu.memory_space<vmem>>, vector<1x8x64xbf16>,
    } else {
    }
    return
  }
  func.func @transform_0(%arg0: i32, %arg1: i32, %arg2: memref<1xi32, #tpu.memory_space<smem>>, %arg3: memref<1xi32, #tpu.memory_space<smem>>) -> (i32, i32, i32, i32) {
    %0 = arith.index_cast %arg1 : i32 to index
    %1 = memref.load %arg2[%0] : memref<1xi32, #tpu.memory_space<smem>>
    %c0_i32 = arith.constant 0 : i32
    %c0_i32_0 = arith.constant 0 : i32
    %c0_i32_1 = arith.constant 0 : i32
    return %arg0, %c0_i32, %1, %c0_i32_0 : i32, i32, i32, i32
  }
  func.func @transform_1(%arg0: i32, %arg1: i32, %arg2: memref<1xi32, #tpu.memory_space<smem>>, %arg3: memref<1xi32, #tpu.memory_space<smem>>) -> (i32, i32, i32, i32) {
    %0 = arith.index_cast %arg1 : i32 to index
    %1 = memref.load %arg3[%0] : memref<1xi32, #tpu.memory_space<smem>>
    %c0_i32 = arith.constant 0 : i32
    %c0_i32_0 = arith.constant 0 : i32
    %c0_i32_1 = arith.constant 0 : i32
    return %arg0, %c0_i32, %1, %c0_i32_0 : i32, i32, i32, i32
  }
  func.func @transform_2(%arg0: i32, %arg1: i32, %arg2: memref<1xi32, #tpu.memory_space<smem>>, %arg3: memref<1xi32, #tpu.memory_space<smem>>) -> (i32, i32, i32, i32) {
    %0 = arith.index_cast %arg1 : i32 to index
    %1 = memref.load %arg3[%0] : memref<1xi32, #tpu.memory_space<smem>>
    %c0_i32 = arith.constant 0 : i32
    %c0_i32_0 = arith.constant 0 : i32
    %c0_i32_1 = arith.constant 0 : i32
    return %arg0, %c0_i32, %1, %c0_i32_0 : i32, i32, i32, i32
  }
  func.func @transform_3(%arg0: i32, %arg1: i32, %arg2: memref<1xi32, #tpu.memory_space<smem>>, %arg3: memref<1xi32, #tpu.memory_space<smem>>) -> (i32, i32, i32) {
    %0 = arith.index_cast %arg1 : i32 to index
    %1 = memref.load %arg2[%0] : memref<1xi32, #tpu.memory_space<smem>>
    %c0_i32 = arith.constant 0 : i32
    %c0_i32_0 = arith.constant 0 : i32
    return %arg0, %1, %c0_i32 : i32, i32, i32
  }
}

module attributes {stable_mosaic.version = 11 : i64} {
  func.func @_linear_kernel(%arg0: i32, %arg1: memref<16x64xbf16, #tpu.memory_space<vmem>>, %arg2: memref<64x32xbf16, #tpu.memory_space<vmem>>, %arg3: memref<16x32xf32, #tpu.memory_space<vmem>>) attributes {dimension_semantics = [#tpu.dimension_semantics<parallel>], iteration_bounds = array<i64: 1>, scalar_prefetch = 0 : i64, scratch_operands = 0 : i64, tpu.core_type = #tpu.core_type<tc>, window_params = [{transform_indices = @transform_0, window_bounds = array<i64: 16, 64>}, {pipeline_mode = #tpu.pipeline_mode<synchronous>, transform_indices = @transform_1, window_bounds = array<i64: 64, 32>}, {transform_indices = @transform_2, window_bounds = array<i64: 16, 32>}]} {
    %c0 = arith.constant 0 : index
    %c0_0 = arith.constant 0 : index
    %0 = vector.load %arg1[%c0, %c0_0] : memref<16x64xbf16, #tpu.memory_space<vmem>>, vector<16x64xbf16>
    %c0_1 = arith.constant 0 : index
    %c0_2 = arith.constant 0 : index
    %1 = vector.load %arg2[%c0_1, %c0_2] : memref<64x32xbf16, #tpu.memory_space<vmem>>, vector<64x32xbf16>
    %cst = arith.constant dense<0.000000e+00> : vector<16x32xf32>
    %2 = tpu.matmul %0, %1, %cst {dimension_numbers = #tpu.dot_dimension_numbers<[1], [0], [0], [1], [0, 0, 1, 1], [], []>} : vector<16x64xbf16>, vector<64x32xbf16>, vector<16x32xf32> -> vector<16x32xf32>
    %c0_3 = arith.constant 0 : index
    %c0_4 = arith.constant 0 : index
    %3 = vector.load %arg3[%c0_3, %c0_4] : memref<16x32xf32, #tpu.memory_space<vmem>>, vector<16x32xf32>
    tpu.vector_store %arg3[%c0_3, %c0_4], %2 {strides = array<i32>} : memref<16x32xf32, #tpu.memory_space<vmem>>, vector<16x32xf32>,
    return
  }
  func.func @transform_0(%arg0: i32) -> (i32, i32) {
    %c0_i32 = arith.constant 0 : i32
    %c0_i32_0 = arith.constant 0 : i32
    return %arg0, %c0_i32 : i32, i32
  }
  func.func @transform_1(%arg0: i32) -> (i32, i32) {
    %c0_i32 = arith.constant 0 : i32
    %c0_i32_0 = arith.constant 0 : i32
    %c0_i32_1 = arith.constant 0 : i32
    return %c0_i32, %c0_i32_0 : i32, i32
  }
  func.func @transform_2(%arg0: i32) -> (i32, i32) {
    %c0_i32 = arith.constant 0 : i32
    %c0_i32_0 = arith.constant 0 : i32
    return %arg0, %c0_i32 : i32, i32
  }
}

</mosaic_0001>

<bundles_post_ra>
// kernel: attention_forward.7
= control target key start
LH: loop header
LB: loop body
LE: loop exit
PB: predicated region body
PF: predicated region fallthrough
CT: control target
= control target key end

     0   :  { %s452_s9 = smov 0   ;;  %s454_s10 = smov 0   ;;  %s497_s0 = inlined_call_operand.vmem [shape: f32[2,8,32], index: 0, kind: input, shape index: {}]   ;;  %s498_s1 = inlined_call_operand.vmem [shape: bf16[32,64], index: 1, kind: input, shape index: {}]   ;;  %s499_s2 = inlined_call_operand.vmem [shape: bf16[2,4,8,16], index: 2, kind: output, shape index: {}]  }
   0x1   :  { %s456_s11 = smov 0  }
   0x2 LB: > { %s24_s12 = sadd.s32 1, %s426_s10  ;;  %p349_p0 = scmp.ge.s32.totalorder %s430_s11, 1  ;;  %s430_s11 = sphi %s456_s11, %s12_s11   ;;  %s426_s10 = sphi %s454_s10, %s501_s10   ;;  %s422_s9 = sphi %s452_s9, %s500_s9  }
   0x3   : > { %p26_p1 = scmp.ge.s32.totalorder %s24_s12, 2  ;;  %p130_p2 = scmp.lt.s32.totalorder %s430_s11, 3 }
   0x5   : > { %s503_s12 = smov (%p26_p1, %s24_s12), 0  ;;  %p131_p3 = pnand %p349_p0, %p130_p2 }
   0x6   : > { %p157_p4 = scmp.lt.s32.totalorder (!%p131_p3), %s422_s9, 1  ;;  %s434_s25 = smov (!%p131_p3), 96  }
   0x7   : > { %134 = sbr.rel (%p131_p3) target bundleno = 494 (0x1ee), region = 28  ;;  %s435_s26 = smov (!%p131_p3), 112  }
   0x8   : > { %s436_s27 = smov (!%p131_p3), 80  }
   0xc   : > { %s505_s9 = smov (!%p157_p4, %s422_s9), 1  ;;  %vm175_vm0 = vcmask 261120   ;;  %v404_v3 = vld [vmem:[%s498_s1 + $0x8] sm:$0xff]   ;;  %v432_v4 = vmov 0.0   ;;  %vm433_vm1 = vmmov 0   ;;  %v405_v5 = vld [vmem:[%s498_s1] sm:$0xff]  }
   0xd   : > { %s350_s13 = sshll.u32 %s505_s9, 3  ;;  %367 = vmatprep.subr.bf16.mxu0 %v432_v4  ;;  %371 = vmatprep.mubr.msk.bf16.mxu0 %vm433_vm1, %v432_v4  ;;  %s362_s21 = sshll.u32 %s505_s9, 4  ;;  %vm245_vm2 = vcmask 125952  }
   0xe   : > { %s163_s16 = scalar_lea.vmem %s497_s0, %s350_s13  ;;  %368 = vmatpush3.bf16.msra.mxu0 %v404_v3  ;;  %s171_s24 = scalar_lea.vmem %s499_s2, %s362_s21 }
   0xf   : > { %v173_v0 = vld [vmem:[%s163_s16] sm:$0xff]  ;;  %369 = vmatprep.subr.bf16.mxu0 %v432_v4 }
  0x10   : > { %v174_v1 = vmul.f32 %v173_v0, %v173_v0 }
  0x12   : > { %v176_v2 = vsel %vm175_vm0, %v174_v1, 0.0  ;;  %370 = vmatpush3.bf16.msra.mxu0 %v405_v5 }
  0x13   : > { %177 = vadd.xlane.f32.xlu0 %v176_v2 }
  0x9c   : > { %v178_v6 = vpop.xlane.xlu0 %177 }
  0x9d   : > { %v180_v7 = vmul.f32 0.03125, %v178_v6 }
  0x9f   : > { %v181_v8 = vadd.f32 1.1920929e-07, %v180_v7 }
  0xa1   : > { %406 = vrsqrt.f32 %v181_v8 }
  0xae   : > { %v407_v9 = vpop.eup %406 }
  0xaf   : > { %v183_v10 = vmul.f32 %v407_v9, %v173_v0 }
  0xb1   : > { %v184_v11 = vpack.c.bf16 %v183_v10, %v183_v10 }
  0xb3   : > { %372 = vmatmul.mubr.msk.bf16.vlgmr.msra.gmra.mxu0 %vm175_vm0, %v184_v11 }
 0x173   : > { %v238_v12 = vpop.f32.mrf.mxu0 }
 0x174   : > { %v244_v13 = vpack.c.bf16 %v238_v12, %v238_v12 }
 0x175   : > { %v373_v14 = vpop.f32.mrf.mxu0 }
 0x176   : > { %255 = vrot.lane.b32.xlu1 %v244_v13, %s434_s25  ;;  %250 = vrot.lane.b32.xlu0 %v244_v13, %s435_s26  ;;  %246 = vst.msk [vmem:[%s171_s24] sm:$0xf] %vm245_vm2, %v244_v13 }
 0x177   : > { %v241_v15 = vpop.f32.mrf.mxu0 }
 0x179   : > { %v374_v16 = vpop.f32.mrf.mxu0 }
 0x17a   : > { %260 = vrot.lane.b32.xlu1 %v244_v13, %s436_s27 }
 0x1e8   : > { %v256_v17 = vpop.permute.xlu1 %255  ;;  %v251_v18 = vpop.permute.xlu0 %250 }
 0x1e9   : > { %358 = vst.msk [vmem:[%s171_s24 + $0x8] sm:$0xf] %vm245_vm2, %v256_v17  ;;  %357 = vst.msk [vmem:[%s171_s24 + $0x4] sm:$0xf] %vm245_vm2, %v251_v18 }
 0x1ec   : > { %v261_v19 = vpop.permute.xlu1 %260 }
 0x1ed   : > { %359 = vst.msk [vmem:[%s171_s24 + $0xc] sm:$0xf] %vm245_vm2, %v261_v19 }
 0x1ee PF: > { %s12_s11 = sadd.s32 1, %s430_s11   ;;  %s500_s9 = smov %s426_s10 }
 0x1ef   : > { %p9_p5 = scmp.ge.s32.totalorder %s12_s11, 4   ;;  %s501_s10 = smov %s503_s12 }
 0x1f1   :  { %11 = sbr.rel (!%p9_p5) target bundleno = 2 (0x2), region = 61 }

// kernel: attention_forward.6
= control target key start
LH: loop header
LB: loop body
LE: loop exit
PB: predicated region body
PF: predicated region fallthrough
CT: control target
= control target key end

     0   :  { %9 = vsyncpa [#allocation3], 0  ;;  %s809_s15 = smov 0   ;;  %s811_s16 = smov 0   ;;  %s904_s0 = inlined_call_operand.vmem [shape: f32[2,8,32], index: 0, kind: input, shape index: {}]   ;;  %s905_s1 = inlined_call_operand.hbm [shape: bf16[32,64], index: 1, kind: input, shape index: {}]   ;;  %s906_s2 = inlined_call_operand.vmem [shape: f32[8,8], index: 2, kind: input, shape index: {}]   ;;  %s907_s3 = inlined_call_operand.vmem [shape: f32[8,8], index: 3, kind: input, shape index: {}]   ;;  %s908_s4 = inlined_call_operand.vmem [shape: bf16[2,4,8,16], index: 4, kind: output, shape index: {}]  }
   0x1   :  { %s813_s17 = smov 0  }
   0x2 LB: > { %s613_s18 = sadd.s32 4294967295, %s766_s17   ;;  %s27_s19 = sadd.s32 1, %s762_s16  ;;  %s766_s17 = sphi %s813_s17, %s15_s17   ;;  %s762_s16 = sphi %s811_s16, %s912_s16   ;;  %s758_s15 = sphi %s809_s15, %s911_s15  }
   0x3   : > { %p29_p0 = scmp.ge.s32.totalorder %s27_s19, 2  ;;  %p615_p1 = scmp.ge.s32.totalorder %s766_s17, 1 }
   0x4   : > { %p161_p2 = scmp.lt.s32.totalorder %s766_s17, 3  ;;  %p834_p4 = scmp.eq.s32.totalorder %s613_s18, 0 }
   0x5   : > { %s914_s19 = smov (%p29_p0, %s27_s19), 0  ;;  %s768_s22 = smov [#allocation2]  }
   0x6   : > { %p830_p3 = pnand %p615_p1, %p161_p2  ;;  %s173_s23 = sshll.u32 %s768_s22, 4  ;;  %s174_s23 = int_to_ptr.vmem [resolvable:$true] %s173_s23 }
   0x7   : > { %s725_s24 = scalar_lea.vmem %s174_s23, 256  ;;  %p733_p11 = scmp.lt.s32.totalorder %s174_s23, %s174_s23 }
   0x8   : > { %p649_p5 = pneg %p830_p3  ;;  %p726_p8 = scmp.ne.s32.totalorder %s174_s23, %s725_s24 }
   0x9   : > { %p734_p12 = scmp.lt.s32.totalorder %s725_s24, %s725_s24 }
   0xa   : > { %p650_p6 = pnand %p834_p4, %p649_p5 }
   0xb   : > { %p735_p13 = por %p734_p12, %p733_p11 }
   0xc   : > { %p716_p7 = pneg %p650_p6 }
   0xe   : > { %p728_p9 = pnand %p726_p8, %p716_p7 }
  0x10   : > { %p729_p10 = pneg %p728_p9 }
  0x12   : > { %p736_p0 = pnand %p735_p13, %p729_p10 }
  0x14   : > { %739 = shalt.err (!%p736_p0)
}
  0x15   : > { %s769_s25 = smov 64   ;;  %s770_s26 = smov 4  }
  0x16   : > { %652 = dma.hbm_to_vmem [thread:$0]  (!%p650_p6), %s905_s1, 256, %s174_s23, [#allocation3], %s769_s25, %s769_s25, %s770_s26  }
  0x17   : > { %213 = sbr.rel (%p830_p3) target bundleno = 641 (0x281), region = 36 }
  0x1c   : > { %753 = dma.done.wait (%p834_p4), [#allocation3], 256  }
  0x1d   : > { %755 = vsyncadd (%p834_p4), [#allocation3], 4294967040  ;;  %p252_p1 = scmp.lt.s32.totalorder %s758_s15, 1  ;;  %vm278_vm0 = vcmask 261120   ;;  %v710_v3 = vld [vmem:[#allocation2 + $0x8] sm:$0xff]   ;;  %v771_v4 = vmov 0.0  }
  0x1e   : > { %637 = vmatprep.subr.bf16.mxu0 %v771_v4  ;;  %vm772_vm1 = vmmov 0   ;;  %v711_v5 = vld [vmem:[#allocation2] sm:$0xff]   ;;  %s773_s9 = smov 16   ;;  %s774_s10 = smov 24   ;;  %vm371_vm2 = vcmask 64512   ;;  %vm374_vm3 = vcmask 125952  }
  0x1f   : > { %s916_s15 = smov (!%p252_p1, %s758_s15), 1  ;;  %641 = vmatprep.mubr.msk.bf16.mxu0 %vm772_vm1, %v771_v4  ;;  %638 = vmatpush3.bf16.msra.mxu0 %v710_v3  ;;  %v348_v6 = vld [vmem:[%s907_s3] sm:$0xff]  ;;  %s775_s11 = smov 40  }
  0x20   : > { %s622_s29 = sshll.u32 %s916_s15, 3  ;;  %639 = vmatprep.subr.bf16.mxu0 %v771_v4  ;;  %393 = vrot.lane.b32.xlu1 %v348_v6, %s773_s9  ;;  %v866_v7 = vld [vmem:[%s906_s2] sm:$0xff]  ;;  %s776_s14 = smov 32  }
  0x21   : > { %s258_s6 = scalar_lea.vmem %s904_s0, %s622_s29  ;;  %s777_s18 = smov 56  }
  0x22   : > { %v276_v0 = vld [vmem:[%s258_s6] sm:$0xff]  ;;  %s778_s20 = smov 48   ;;  %s779_s21 = smov 8  }
  0x23   : > { %v277_v1 = vmul.f32 %v276_v0, %v276_v0  ;;  %640 = vmatpush3.bf16.msra.mxu0 %v711_v5  ;;  %s780_s22 = smov 120   ;;  %s781_s23 = smov 112  }
  0x24   : > { %418 = vrot.lane.b32.xlu1 %v348_v6, %s775_s11  ;;  %s782_s24 = smov 96   ;;  %s783_s25 = smov 80  }
  0x25   : > { %v279_v2 = vsel %vm278_vm0, %v277_v1, 0.0  ;;  %s633_s26 = sshll.u32 %s916_s15, 4 }
  0x26   : > { %280 = vadd.xlane.f32.xlu0 %v279_v2  ;;  %s274_s29 = scalar_lea.vmem %s908_s4, %s633_s26 }
  0x28   : > { %431 = vrot.lane.b32.xlu1 %v348_v6, %s776_s14 }
  0x2c   : > { %456 = vrot.lane.b32.xlu1 %v348_v6, %s777_s18 }
  0x30   : > { %469 = vrot.lane.b32.xlu1 %v348_v6, %s778_s20 }
  0x34   : > { %351 = vrot.lane.b32.xlu1 %v348_v6, %s779_s21 }
  0x38   : > { %376 = vrot.lane.b32.xlu1 %v866_v7, %s773_s9 }
  0x3c   : > { %380 = vrot.lane.b32.xlu0 %v348_v6, %s774_s10  ;;  %414 = vrot.lane.b32.xlu1 %v866_v7, %s776_s14 }
  0x40   : > { %389 = vrot.lane.b32.xlu0 %v866_v7, %s774_s10  ;;  %452 = vrot.lane.b32.xlu1 %v866_v7, %s778_s20 }
  0x44   : > { %427 = vrot.lane.b32.xlu0 %v866_v7, %s775_s11 }
  0x48   : > { %465 = vrot.lane.b32.xlu0 %v866_v7, %s777_s18 }
  0x92   : > { %v394_v14 = vpop.permute.xlu1 %393 }
  0x96   : > { %v419_v15 = vpop.permute.xlu1 %418 }
  0x9a   : > { %v432_v16 = vpop.permute.xlu1 %431 }
  0x9e   : > { %v457_v18 = vpop.permute.xlu1 %456 }
  0xa2   : > { %v470_v26 = vpop.permute.xlu1 %469 }
  0xa6   : > { %v352_v30 = vpop.permute.xlu1 %351 }
  0xaa   : > { %v377_v33 = vpop.permute.xlu1 %376 }
  0xae   : > { %v415_v35 = vpop.permute.xlu1 %414 }
  0xaf   : > { %v281_v8 = vpop.xlane.xlu0 %280 }
  0xb0   : > { %v283_v9 = vmul.f32 0.03125, %v281_v8 }
  0xb2   : > { %v284_v10 = vadd.f32 1.1920929e-07, %v283_v9  ;;  %v453_v37 = vpop.permute.xlu1 %452 }
  0xb3   : > { %v381_v17 = vpop.permute.xlu0 %380 }
  0xb4   : > { %712 = vrsqrt.f32 %v284_v10 }
  0xb7   : > { %v390_v34 = vpop.permute.xlu0 %389 }
  0xbb   : > { %v428_v36 = vpop.permute.xlu0 %427 }
  0xbf   : > { %v466_v38 = vpop.permute.xlu0 %465 }
  0xc1   : > { %v713_v11 = vpop.eup %712 }
  0xc2   : > { %v286_v12 = vmul.f32 %v713_v11, %v276_v0 }
  0xc4   : > { %v287_v13 = vpack.c.bf16 %v286_v12, %v286_v12 }
  0xc6   : > { %642 = vmatmul.mubr.msk.bf16.vlgmr.msra.gmra.mxu0 %vm278_vm0, %v287_v13 }
 0x186   : > { %v341_v19 = vpop.f32.mrf.mxu0 }
 0x187   : > { %v396_v20 = vmul.f32 %v394_v14, %v341_v19  ;;  %v383_v21 = vmul.f32 %v381_v17, %v341_v19  ;;  %v434_v24 = vmul.f32 %v432_v16, %v341_v19  ;;  %v421_v25 = vmul.f32 %v419_v15, %v341_v19 }
 0x188   : > { %v643_v22 = vpop.f32.mrf.mxu0  ;;  %v472_v28 = vmul.f32 %v470_v26, %v341_v19  ;;  %v459_v29 = vmul.f32 %v457_v18, %v341_v19  ;;  %v354_v31 = vmul.f32 %v352_v30, %v341_v19  ;;  %v365_v32 = vmul.f32 %v348_v6, %v341_v19 }
 0x189   : > { %398 = vrot.lane.b32.xlu0 %v396_v20, %s779_s21  ;;  %385 = vrot.lane.b32.xlu1 %v383_v21, %s780_s22  ;;  %v379_v39 = vmul.f32 %v377_v33, %v341_v19  ;;  %v392_v40 = vmul.f32 %v390_v34, %v341_v19  ;;  %v417_v46 = vmul.f32 %v415_v35, %v341_v19 }
 0x18a   : > { %v344_v23 = vpop.f32.mrf.mxu0  ;;  %v430_v47 = vmul.f32 %v428_v36, %v341_v19  ;;  %v468_v52 = vmul.f32 %v466_v38, %v341_v19  ;;  %v455_v54 = vmul.f32 %v453_v37, %v341_v19  ;;  %v349_v63 = vmul.f32 %v866_v7, %v341_v19 }
 0x18c   : > { %v644_v27 = vpop.f32.mrf.mxu0 }
 0x18d   : > { %436 = vrot.lane.b32.xlu0 %v434_v24, %s779_s21  ;;  %423 = vrot.lane.b32.xlu1 %v421_v25, %s780_s22 }
 0x191   : > { %474 = vrot.lane.b32.xlu0 %v472_v28, %s779_s21  ;;  %461 = vrot.lane.b32.xlu1 %v459_v29, %s780_s22 }
 0x195   : > { %356 = vrot.lane.b32.xlu0 %v354_v31, %s780_s22  ;;  %361 = vrot.lane.b32.xlu1 %v866_v7, %s779_s21 }
 0x199   : > { %367 = vrot.lane.b32.xlu1 %v365_v32, %s779_s21 }
 0x1fb   : > { %v386_v41 = vpop.permute.xlu1 %385  ;;  %v399_v42 = vpop.permute.xlu0 %398 }
 0x1fc   : > { %v388_v43 = vsub.f32 %v379_v39, %v386_v41  ;;  %v401_v44 = vadd.f32 %v399_v42, %v392_v40 }
 0x1fe   : > { %v695_v45 = vpack.i.bf16 %v401_v44, %v388_v43 }
 0x1ff   : > { %v424_v48 = vpop.permute.xlu1 %423  ;;  %v437_v49 = vpop.permute.xlu0 %436 }
 0x200   : > { %v426_v50 = vsub.f32 %v417_v46, %v424_v48  ;;  %v439_v51 = vadd.f32 %v437_v49, %v430_v47  ;;  %696 = vrot.lane.b32.xlu0 %v695_v45, %s781_s23 }
 0x202   : > { %v700_v53 = vpack.i.bf16 %v439_v51, %v426_v50 }
 0x203   : > { %v462_v55 = vpop.permute.xlu1 %461  ;;  %v475_v56 = vpop.permute.xlu0 %474 }
 0x204   : > { %v464_v57 = vsub.f32 %v455_v54, %v462_v55  ;;  %v477_v58 = vadd.f32 %v475_v56, %v468_v52  ;;  %701 = vrot.lane.b32.xlu1 %v700_v53, %s782_s24 }
 0x206   : > { %v705_v59 = vpack.i.bf16 %v477_v58, %v464_v57 }
 0x207   : > { %v362_v60 = vpop.permute.xlu1 %361  ;;  %v357_v61 = vpop.permute.xlu0 %356 }
 0x208   : > { %706 = vrot.lane.b32.xlu0 %v705_v59, %s783_s25  ;;  %v364_v62 = vmul.f32 %v362_v60, %v341_v19  ;;  %v359_v1 = vsub.f32 %v349_v63, %v357_v61 }
 0x20b   : > { %v368_v0 = vpop.permute.xlu1 %367 }
 0x20c   : > { %v370_v2 = vadd.f32 %v368_v0, %v364_v62 }
 0x20e   : > { %v372_v3 = vsel %vm371_vm2, %v359_v1, %v370_v2 }
 0x20f   : > { %v373_v4 = vpack.c.bf16 %v372_v3, %v372_v3 }
 0x211   : > { %375 = vst.msk [vmem:[%s274_s29] sm:$0xf] %vm374_vm3, %v373_v4 }
 0x272   : > { %v697_v5 = vpop.permute.xlu0 %696 }
 0x273   : > { %v699_v6 = vunpack.i.h.bf16 %v697_v5  ;;  %v698_v8 = vunpack.i.l.bf16 %v697_v5 }
 0x275   : > { %v410_v7 = vsel %vm371_vm2, %v698_v8, %v699_v6 }
 0x276   : > { %v411_v9 = vpack.c.bf16 %v410_v7, %v410_v7  ;;  %v702_v10 = vpop.permute.xlu1 %701 }
 0x277   : > { %v704_v11 = vunpack.i.h.bf16 %v702_v10  ;;  %v703_v12 = vunpack.i.l.bf16 %v702_v10 }
 0x278   : > { %628 = vst.msk [vmem:[%s274_s29 + $0x4] sm:$0xf] %vm374_vm3, %v411_v9 }
 0x279   : > { %v448_v13 = vsel %vm371_vm2, %v703_v12, %v704_v11 }
 0x27a   : > { %v449_v14 = vpack.c.bf16 %v448_v13, %v448_v13  ;;  %v707_v15 = vpop.permute.xlu0 %706 }
 0x27b   : > { %v709_v16 = vunpack.i.h.bf16 %v707_v15  ;;  %v708_v17 = vunpack.i.l.bf16 %v707_v15 }
 0x27c   : > { %629 = vst.msk [vmem:[%s274_s29 + $0x8] sm:$0xf] %vm374_vm3, %v449_v14 }
 0x27d   : > { %v486_v18 = vsel %vm371_vm2, %v708_v17, %v709_v16 }
 0x27e   : > { %v487_v19 = vpack.c.bf16 %v486_v18, %v486_v18 }
 0x280   : > { %630 = vst.msk [vmem:[%s274_s29 + $0xc] sm:$0xf] %vm374_vm3, %v487_v19 }
 0x281 PF: > { %s15_s17 = sadd.s32 1, %s766_s17   ;;  %s911_s15 = smov %s762_s16 }
 0x282   : > { %p12_p2 = scmp.ge.s32.totalorder %s15_s17, 4   ;;  %s912_s16 = smov %s914_s19 }
 0x284   :  { %14 = sbr.rel (!%p12_p2) target bundleno = 2 (0x2), region = 80 }
 0x289   :  { %517 = vsyncpa [#allocation3], 1 }
 0x28a   :  { %519 = vsyncpa [#allocation3 + $0x1], 1 }

// kernel: attention_forward.5
= control target key start
LH: loop header
LB: loop body
LE: loop exit
PB: predicated region body
PF: predicated region fallthrough
CT: control target
= control target key end

     0   :  { %s734_s15 = smov 0   ;;  %s736_s16 = smov 0   ;;  %s809_s0 = inlined_call_operand.vmem [shape: f32[2,8,32], index: 0, kind: input, shape index: {}]   ;;  %s810_s1 = inlined_call_operand.vmem [shape: bf16[32,64], index: 1, kind: input, shape index: {}]   ;;  %s811_s2 = inlined_call_operand.vmem [shape: f32[8,8], index: 2, kind: input, shape index: {}]   ;;  %s812_s3 = inlined_call_operand.vmem [shape: f32[8,8], index: 3, kind: input, shape index: {}]   ;;  %s813_s4 = inlined_call_operand.vmem [shape: bf16[2,4,8,16], index: 4, kind: output, shape index: {}]  }
   0x1   :  { %s738_s17 = smov 0  }
   0x2 LB: > { %s26_s18 = sadd.s32 1, %s690_s16  ;;  %p592_p0 = scmp.ge.s32.totalorder %s694_s17, 1  ;;  %s694_s17 = sphi %s738_s17, %s14_s17   ;;  %s690_s16 = sphi %s736_s16, %s815_s16   ;;  %s686_s15 = sphi %s734_s15, %s814_s15  }
   0x3   : > { %p28_p1 = scmp.ge.s32.totalorder %s26_s18, 2  ;;  %p198_p2 = scmp.lt.s32.totalorder %s694_s17, 3 }
   0x5   : > { %s817_s18 = smov (%p28_p1, %s26_s18), 0  ;;  %p199_p3 = pnand %p592_p0, %p198_p2 }
   0x6   : > { %p237_p4 = scmp.lt.s32.totalorder (!%p199_p3), %s686_s15, 1  ;;  %s698_s29 = smov (!%p199_p3), 16  }
   0x7   : > { %202 = sbr.rel (%p199_p3) target bundleno = 622 (0x26e), region = 36  ;;  %s699_s30 = smov (!%p199_p3), 24  }
   0x8   : > { %s700_s5 = smov (!%p199_p3), 40   ;;  %s701_s8 = smov (!%p199_p3), 32  }
   0x9   : > { %s702_s9 = smov (!%p199_p3), 56   ;;  %s703_s10 = smov (!%p199_p3), 48  }
   0xa   : > { %s704_s11 = smov (!%p199_p3), 8   ;;  %s705_s12 = smov (!%p199_p3), 120  }
   0xb   : > { %s706_s13 = smov (!%p199_p3), 112   ;;  %s707_s14 = smov (!%p199_p3), 96  }
   0xc   : > { %s819_s15 = smov (!%p237_p4, %s686_s15), 1  ;;  %vm263_vm0 = vcmask 261120   ;;  %v668_v3 = vld [vmem:[%s810_s1 + $0x8] sm:$0xff]   ;;  %v696_v4 = vmov 0.0   ;;  %vm697_vm1 = vmmov 0   ;;  %v669_v5 = vld [vmem:[%s810_s1] sm:$0xff]  }
   0xd   : > { %s593_s19 = sshll.u32 %s819_s15, 3  ;;  %608 = vmatprep.subr.bf16.mxu0 %v696_v4  ;;  %612 = vmatprep.mubr.msk.bf16.mxu0 %vm697_vm1, %v696_v4  ;;  %v333_v6 = vld [vmem:[%s812_s3] sm:$0xff]  ;;  %s604_s20 = sshll.u32 %s819_s15, 4  ;;  %vm356_vm2 = vcmask 64512   ;;  %vm359_vm3 = vcmask 125952  }
   0xe   : > { %s243_s22 = scalar_lea.vmem %s809_s0, %s593_s19  ;;  %609 = vmatpush3.bf16.msra.mxu0 %v668_v3  ;;  %378 = vrot.lane.b32.xlu1 %v333_v6, %s698_s29  ;;  %v771_v7 = vld [vmem:[%s811_s2] sm:$0xff]  ;;  %s708_s19 = smov 80  }
   0xf   : > { %v261_v0 = vld [vmem:[%s243_s22] sm:$0xff]  ;;  %610 = vmatprep.subr.bf16.mxu0 %v696_v4  ;;  %s259_s23 = scalar_lea.vmem %s813_s4, %s604_s20 }
  0x10   : > { %v262_v1 = vmul.f32 %v261_v0, %v261_v0 }
  0x12   : > { %v264_v2 = vsel %vm263_vm0, %v262_v1, 0.0  ;;  %611 = vmatpush3.bf16.msra.mxu0 %v669_v5  ;;  %403 = vrot.lane.b32.xlu1 %v333_v6, %s700_s5 }
  0x13   : > { %265 = vadd.xlane.f32.xlu0 %v264_v2 }
  0x16   : > { %416 = vrot.lane.b32.xlu1 %v333_v6, %s701_s8 }
  0x1a   : > { %441 = vrot.lane.b32.xlu1 %v333_v6, %s702_s9 }
  0x1e   : > { %454 = vrot.lane.b32.xlu1 %v333_v6, %s703_s10 }
  0x22   : > { %336 = vrot.lane.b32.xlu1 %v333_v6, %s704_s11 }
  0x26   : > { %361 = vrot.lane.b32.xlu1 %v771_v7, %s698_s29 }
  0x29   : > { %365 = vrot.lane.b32.xlu0 %v333_v6, %s699_s30 }
  0x2a   : > { %399 = vrot.lane.b32.xlu1 %v771_v7, %s701_s8 }
  0x2d   : > { %374 = vrot.lane.b32.xlu0 %v771_v7, %s699_s30 }
  0x2e   : > { %437 = vrot.lane.b32.xlu1 %v771_v7, %s703_s10 }
  0x31   : > { %412 = vrot.lane.b32.xlu0 %v771_v7, %s700_s5 }
  0x35   : > { %450 = vrot.lane.b32.xlu0 %v771_v7, %s702_s9 }
  0x80   : > { %v379_v14 = vpop.permute.xlu1 %378 }
  0x84   : > { %v404_v15 = vpop.permute.xlu1 %403 }
  0x88   : > { %v417_v16 = vpop.permute.xlu1 %416 }
  0x8c   : > { %v442_v18 = vpop.permute.xlu1 %441 }
  0x90   : > { %v455_v26 = vpop.permute.xlu1 %454 }
  0x94   : > { %v337_v30 = vpop.permute.xlu1 %336 }
  0x98   : > { %v362_v33 = vpop.permute.xlu1 %361 }
  0x9c   : > { %v266_v8 = vpop.xlane.xlu0 %265  ;;  %v400_v35 = vpop.permute.xlu1 %399 }
  0x9d   : > { %v268_v9 = vmul.f32 0.03125, %v266_v8 }
  0x9f   : > { %v269_v10 = vadd.f32 1.1920929e-07, %v268_v9 }
  0xa0   : > { %v366_v17 = vpop.permute.xlu0 %365  ;;  %v438_v37 = vpop.permute.xlu1 %437 }
  0xa1   : > { %670 = vrsqrt.f32 %v269_v10 }
  0xa4   : > { %v375_v34 = vpop.permute.xlu0 %374 }
  0xa8   : > { %v413_v36 = vpop.permute.xlu0 %412 }
  0xac   : > { %v451_v38 = vpop.permute.xlu0 %450 }
  0xae   : > { %v671_v11 = vpop.eup %670 }
  0xaf   : > { %v271_v12 = vmul.f32 %v671_v11, %v261_v0 }
  0xb1   : > { %v272_v13 = vpack.c.bf16 %v271_v12, %v271_v12 }
  0xb3   : > { %613 = vmatmul.mubr.msk.bf16.vlgmr.msra.gmra.mxu0 %vm263_vm0, %v272_v13 }
 0x173   : > { %v326_v19 = vpop.f32.mrf.mxu0 }
 0x174   : > { %v381_v20 = vmul.f32 %v379_v14, %v326_v19  ;;  %v368_v21 = vmul.f32 %v366_v17, %v326_v19  ;;  %v419_v24 = vmul.f32 %v417_v16, %v326_v19  ;;  %v406_v25 = vmul.f32 %v404_v15, %v326_v19 }
 0x175   : > { %v614_v22 = vpop.f32.mrf.mxu0  ;;  %v457_v28 = vmul.f32 %v455_v26, %v326_v19  ;;  %v444_v29 = vmul.f32 %v442_v18, %v326_v19  ;;  %v339_v31 = vmul.f32 %v337_v30, %v326_v19  ;;  %v350_v32 = vmul.f32 %v333_v6, %v326_v19 }
 0x176   : > { %383 = vrot.lane.b32.xlu0 %v381_v20, %s704_s11  ;;  %370 = vrot.lane.b32.xlu1 %v368_v21, %s705_s12  ;;  %v364_v39 = vmul.f32 %v362_v33, %v326_v19  ;;  %v377_v40 = vmul.f32 %v375_v34, %v326_v19  ;;  %v402_v46 = vmul.f32 %v400_v35, %v326_v19 }
 0x177   : > { %v329_v23 = vpop.f32.mrf.mxu0  ;;  %v415_v47 = vmul.f32 %v413_v36, %v326_v19  ;;  %v453_v52 = vmul.f32 %v451_v38, %v326_v19  ;;  %v440_v54 = vmul.f32 %v438_v37, %v326_v19  ;;  %v334_v63 = vmul.f32 %v771_v7, %v326_v19 }
 0x179   : > { %v615_v27 = vpop.f32.mrf.mxu0 }
 0x17a   : > { %421 = vrot.lane.b32.xlu0 %v419_v24, %s704_s11  ;;  %408 = vrot.lane.b32.xlu1 %v406_v25, %s705_s12 }
 0x17e   : > { %459 = vrot.lane.b32.xlu0 %v457_v28, %s704_s11  ;;  %446 = vrot.lane.b32.xlu1 %v444_v29, %s705_s12 }
 0x182   : > { %341 = vrot.lane.b32.xlu0 %v339_v31, %s705_s12  ;;  %346 = vrot.lane.b32.xlu1 %v771_v7, %s704_s11 }
 0x186   : > { %352 = vrot.lane.b32.xlu1 %v350_v32, %s704_s11 }
 0x1e8   : > { %v371_v41 = vpop.permute.xlu1 %370  ;;  %v384_v42 = vpop.permute.xlu0 %383 }
 0x1e9   : > { %v373_v43 = vsub.f32 %v364_v39, %v371_v41  ;;  %v386_v44 = vadd.f32 %v384_v42, %v377_v40 }
 0x1eb   : > { %v653_v45 = vpack.i.bf16 %v386_v44, %v373_v43 }
 0x1ec   : > { %v409_v48 = vpop.permute.xlu1 %408  ;;  %v422_v49 = vpop.permute.xlu0 %421 }
 0x1ed   : > { %v411_v50 = vsub.f32 %v402_v46, %v409_v48  ;;  %v424_v51 = vadd.f32 %v422_v49, %v415_v47  ;;  %654 = vrot.lane.b32.xlu0 %v653_v45, %s706_s13 }
 0x1ef   : > { %v658_v53 = vpack.i.bf16 %v424_v51, %v411_v50 }
 0x1f0   : > { %v447_v55 = vpop.permute.xlu1 %446  ;;  %v460_v56 = vpop.permute.xlu0 %459 }
 0x1f1   : > { %v449_v57 = vsub.f32 %v440_v54, %v447_v55  ;;  %v462_v58 = vadd.f32 %v460_v56, %v453_v52  ;;  %659 = vrot.lane.b32.xlu1 %v658_v53, %s707_s14 }
 0x1f3   : > { %v663_v59 = vpack.i.bf16 %v462_v58, %v449_v57 }
 0x1f4   : > { %v347_v60 = vpop.permute.xlu1 %346  ;;  %v342_v61 = vpop.permute.xlu0 %341 }
 0x1f5   : > { %664 = vrot.lane.b32.xlu0 %v663_v59, %s708_s19  ;;  %v349_v62 = vmul.f32 %v347_v60, %v326_v19  ;;  %v344_v1 = vsub.f32 %v334_v63, %v342_v61 }
 0x1f8   : > { %v353_v0 = vpop.permute.xlu1 %352 }
 0x1f9   : > { %v355_v2 = vadd.f32 %v353_v0, %v349_v62 }
 0x1fb   : > { %v357_v3 = vsel %vm356_vm2, %v344_v1, %v355_v2 }
 0x1fc   : > { %v358_v4 = vpack.c.bf16 %v357_v3, %v357_v3 }
 0x1fe   : > { %360 = vst.msk [vmem:[%s259_s23] sm:$0xf] %vm359_vm3, %v358_v4 }
 0x25f   : > { %v655_v5 = vpop.permute.xlu0 %654 }
 0x260   : > { %v657_v6 = vunpack.i.h.bf16 %v655_v5  ;;  %v656_v8 = vunpack.i.l.bf16 %v655_v5 }
 0x262   : > { %v395_v7 = vsel %vm356_vm2, %v656_v8, %v657_v6 }
 0x263   : > { %v396_v9 = vpack.c.bf16 %v395_v7, %v395_v7  ;;  %v660_v10 = vpop.permute.xlu1 %659 }
 0x264   : > { %v662_v11 = vunpack.i.h.bf16 %v660_v10  ;;  %v661_v12 = vunpack.i.l.bf16 %v660_v10 }
 0x265   : > { %599 = vst.msk [vmem:[%s259_s23 + $0x4] sm:$0xf] %vm359_vm3, %v396_v9 }
 0x266   : > { %v433_v13 = vsel %vm356_vm2, %v661_v12, %v662_v11 }
 0x267   : > { %v434_v14 = vpack.c.bf16 %v433_v13, %v433_v13  ;;  %v665_v15 = vpop.permute.xlu0 %664 }
 0x268   : > { %v667_v16 = vunpack.i.h.bf16 %v665_v15  ;;  %v666_v17 = vunpack.i.l.bf16 %v665_v15 }
 0x269   : > { %600 = vst.msk [vmem:[%s259_s23 + $0x8] sm:$0xf] %vm359_vm3, %v434_v14 }
 0x26a   : > { %v471_v18 = vsel %vm356_vm2, %v666_v17, %v667_v16 }
 0x26b   : > { %v472_v19 = vpack.c.bf16 %v471_v18, %v471_v18 }
 0x26d   : > { %601 = vst.msk [vmem:[%s259_s23 + $0xc] sm:$0xf] %vm359_vm3, %v472_v19 }
 0x26e PF: > { %s14_s17 = sadd.s32 1, %s694_s17   ;;  %s814_s15 = smov %s690_s16 }
 0x26f   : > { %p11_p5 = scmp.ge.s32.totalorder %s14_s17, 4   ;;  %s815_s16 = smov %s817_s18 }
 0x271   :  { %13 = sbr.rel (!%p11_p5) target bundleno = 2 (0x2), region = 75 }

// kernel: attention_forward.9
= control target key start
LH: loop header
LB: loop body
LE: loop exit
PB: predicated region body
PF: predicated region fallthrough
CT: control target
= control target key end

     0   :  { %v171_v1 = vmov 0.0   ;;  %vm172_vm0 = vmmov 0   ;;  %s209_s0 = inlined_call_operand.vmem [shape: bf16[16,64], index: 0, kind: input, shape index: {}]   ;;  %s210_s1 = inlined_call_operand.vmem [shape: bf16[64,32], index: 1, kind: input, shape index: {}]   ;;  %s211_s2 = inlined_call_operand.hbm [shape: f32[16,32], index: 2, kind: output, shape index: {}]  }
   0x1   :  { %v144_v0 = vld [vmem:[%s210_s1 + $0x18] sm:$0xff]   ;;  %127 = vmatprep.subr.bf16.mxu0 %v171_v1  ;;  %v145_v2 = vld [vmem:[%s210_s1 + $0x10] sm:$0xff]   ;;  %135 = vmatprep.mubr.msk.bf16.mxu0 %vm172_vm0, %v171_v1 }
   0x2   :  { %128 = vmatpush3.bf16.msra.mxu0 %v144_v0 }
   0x3   :  { %129 = vmatprep.subr.bf16.mxu0 %v171_v1 }
   0x4   :  { %7 = vsyncpa [#allocation3], 0  ;;  %v146_v3 = vld [vmem:[%s210_s1 + $0x8] sm:$0xff]   ;;  %v147_v4 = vld [vmem:[%s210_s1] sm:$0xff]   ;;  %vm52_vm1 = vcmask 523264   ;;  %vm97_vm2 = vcmask 261120  }
   0x5   :  { %v148_v5 = vld [vmem:[%s209_s0] sm:$0xff]   ;;  %s173_s19 = smov [#allocation2]  }
   0x6   :  { %130 = vmatpush3.bf16.msra.mxu0 %v145_v2  ;;  %s105_s20 = sshll.u32 %s173_s19, 4  ;;  %s106_s20 = int_to_ptr.vmem [resolvable:$true] %s105_s20 }
   0x7   :  { %131 = vmatprep.subr.bf16.mxu0 %v171_v1  ;;  %s149_s21 = scalar_lea.vmem %s106_s20, 256  ;;  %p154_p1 = scmp.lt.s32.totalorder %s106_s20, %s106_s20 }
   0x8   :  { %p150_p0 = scmp.ne.s32.totalorder %s106_s20, %s149_s21  ;;  %p155_p2 = scmp.lt.s32.totalorder %s149_s21, %s149_s21 }
   0xa   :  { %132 = vmatpush3.bf16.msra.mxu0 %v146_v3  ;;  %p156_p3 = por %p155_p2, %p154_p1 }
   0xb   :  { %133 = vmatprep.subr.bf16.mxu0 %v171_v1 }
   0xc   :  { %p157_p4 = pnand %p156_p3, %p150_p0 }
   0xe   :  { %134 = vmatpush3.bf16.msra.mxu0 %v147_v4 }
  0x11   :  { %136 = vmatmul.mubr.msk.bf16.vlgmr.msra.gmra.mxu0 %vm52_vm1, %v148_v5 }
  0xd1   :  { %v90_v6 = vpop.f32.mrf.mxu0 }
  0xd2   :  { %98 = vst.msk [vmem:[#allocation2] sm:$0xff] %vm97_vm2, %v90_v6 }
  0xd3   :  { %v137_v7 = vpop.f32.mrf.mxu0 }
  0xd5   :  { %v93_v8 = vpop.f32.mrf.mxu0 }
  0xd6   :  { %99 = vst.msk [vmem:[#allocation2 + $0x8] sm:$0xff] %vm97_vm2, %v93_v8 }
  0xd7   :  { %v138_v9 = vpop.f32.mrf.mxu0 }
  0xd8   :  { %160 = shalt.err (!%p157_p4)
}
  0xd9   :  { %s174_s0 = smov 128   ;;  %s175_s1 = smov 8  }
  0xda   :  { %111 = dma.vmem_to_hbm [thread:$0]  %s106_s20, 256, %s211_s2, [#allocation3], %s174_s0, %s174_s0, %s175_s1  }
  0xdb   :  { %169 = dma.done.wait [#allocation3], 256  }
  0xdc   :  { %170 = vsyncadd [#allocation3], 4294967040 }
  0xdd   :  { %115 = vsyncpa [#allocation3], 1 }

// kernel: attention_forward.8
= control target key start
LH: loop header
LB: loop body
LE: loop exit
PB: predicated region body
PF: predicated region fallthrough
CT: control target
= control target key end

     0   :  { %s1856_s22 = smov 0   ;;  %s1858_s23 = smov 0   ;;  %s2148_s0 = inlined_call_operand.<no memory space> [shape: s32[1], index: 0, kind: input, shape index: {}, may-alias: {0,1}]   ;;  %s2149_s1 = inlined_call_operand.<no memory space> [shape: s32[1], index: 1, kind: input, shape index: {}, may-alias: {0,1}]   ;;  %s2150_s2 = inlined_call_operand.vmem [shape: bf16[2,4,8,16], index: 2, kind: input, shape index: {}]   ;;  %s2151_s3 = inlined_call_operand.vmem [shape: bf16[2,4,8,16], index: 3, kind: input, shape index: {}]   ;;  %s2152_s4 = inlined_call_operand.vmem [shape: bf16[2,4,8,16], index: 4, kind: input, shape index: {}]   ;;  %s2153_s5 = inlined_call_operand.vmem [shape: bf16[2,8,64], index: 5, kind: output, shape index: {}]  }
   0x1   :  { %10 = sst [smem:[#allocation6]] %s2148_s0  ;;  %s1860_s24 = smov 0  }
   0x2   :  { %11 = sst [smem:[#allocation7]] %s2149_s1 }
   0x3 LB: > { %s29_s0 = sadd.s32 1, %s1803_s23  ;;  %p1549_p0 = scmp.ge.s32.totalorder %s1807_s24, 1  ;;  %s1807_s24 = sphi %s1860_s24, %s17_s24   ;;  %s1803_s23 = sphi %s1858_s23, %s2155_s23   ;;  %s1799_s22 = sphi %s1856_s22, %s2154_s22  }
   0x4   : > { %p31_p1 = scmp.ge.s32.totalorder %s29_s0, 2  ;;  %p204_p2 = scmp.lt.s32.totalorder %s1807_s24, 3 }
   0x6   : > { %s2157_s0 = smov (%p31_p1, %s29_s0), 0  ;;  %p205_p3 = pnand %p1549_p0, %p204_p2 }
   0x7   : > { %s1874_s1 = sld [smem:[#allocation6]] (!%p205_p3)  ;;  %p254_p4 = scmp.lt.s32.totalorder (!%p205_p3), %s1799_s22, 1 }
   0x8   : > { %208 = sbr.rel (%p205_p3) target bundleno = 1653 (0x675), region = 32  ;;  %s1876_s25 = sld [smem:[#allocation7]] (!%p205_p3) }
   0xd   : > { %s2159_s22 = smov (!%p254_p4, %s1799_s22), 1  ;;  %p256_p5 = scmp.lt.s32.totalorder %s1874_s1, 0 }
   0xe   : > { %s1550_s26 = sshll.u32 %s2159_s22, 2  ;;  %p266_p6 = scmp.lt.s32.totalorder %s1876_s25, 0 }
   0xf   : > { %s257_s27 = scalar_select %p256_p5, %s1874_s1, 0 }
  0x10   : > { %s267_s28 = scalar_select %p266_p6, %s1876_s25, 0 }
  0x11   : > { %s259_s29 = sadd.s32 %s1550_s26, %s257_s27  ;;  %s288_s30 = sadd.s32 %s257_s27, %s2159_s22 }
  0x12   : > { %s1551_s6 = sshll.u32 %s259_s29, 2  ;;  %s269_s7 = sadd.s32 %s1550_s26, %s267_s28 }
  0x13   : > { %s1885_s10 = scalar_lea.vmem %s2150_s2, %s1551_s6  ;;  %s1553_s11 = sshll.u32 %s269_s7, 2 }
  0x14   : > { %s1890_s14 = scalar_lea.vmem %s2151_s3, %s1553_s11  ;;  %s1895_s17 = scalar_lea.vmem %s2152_s4, %s1553_s11 }
  0x15   : > { %s1897_s18 = sshll.u32 %s288_s30, 2  ;;  %p1557_p7 = scmp.ne.s32.totalorder %s1876_s25, 0 }
  0x16   : > { %s290_s21 = scalar_lea.vmem %s2153_s5, %s1897_s18 }
  0x17   : > { %298 = sbr.rel (%p1557_p7) target bundleno = 35 (0x23), region = 36 }
  0x1c   : > { %vm299_vm0 = vcmask 7168   ;;  %vm308_vm1 = vcmask 130048   ;;  %v1809_v0 = vmov -inf   ;;  %v1810_v1 = vmov 0.0  }
  0x1d   : > { %300 = vst.msk [vmem:[#allocation2] sm:$0xff] %vm299_vm0, %v1809_v0  ;;  %301 = vst.msk [vmem:[#allocation2 + $0x8] sm:$0xff] %vm299_vm0, %v1809_v0 }
  0x1e   : > { %302 = vst.msk [vmem:[#allocation2 + $0x10] sm:$0xff] %vm299_vm0, %v1809_v0  ;;  %303 = vst.msk [vmem:[#allocation2 + $0x18] sm:$0xff] %vm299_vm0, %v1809_v0 }
  0x1f   : > { %304 = vst.msk [vmem:[#allocation3] sm:$0xff] %vm299_vm0, %v1810_v1  ;;  %305 = vst.msk [vmem:[#allocation3 + $0x8] sm:$0xff] %vm299_vm0, %v1810_v1 }
  0x20   : > { %306 = vst.msk [vmem:[#allocation3 + $0x10] sm:$0xff] %vm299_vm0, %v1810_v1  ;;  %307 = vst.msk [vmem:[#allocation3 + $0x18] sm:$0xff] %vm299_vm0, %v1810_v1 }
  0x21   : > { %309 = vst.msk [vmem:[#allocation4] sm:$0xff] %vm308_vm1, %v1810_v1  ;;  %310 = vst.msk [vmem:[#allocation4 + $0x8] sm:$0xff] %vm308_vm1, %v1810_v1 }
  0x22   : > { %311 = vst.msk [vmem:[#allocation4 + $0x10] sm:$0xff] %vm308_vm1, %v1810_v1  ;;  %312 = vst.msk [vmem:[#allocation4 + $0x18] sm:$0xff] %vm308_vm1, %v1810_v1 }
  0x23 PF: > { %p1558_p8 = scmp.ge.s32.totalorder %s1876_s25, %s1874_s1 }
  0x25   : > { %316 = sbr.rel (%p1558_p8) target bundleno = 740 (0x2e4), region = 40 }
  0x2a   : > { %v321_v2 = vld [vmem:[%s1890_s14] sm:$0xf]  ;;  %vm329_vm2 = vcmask 130048   ;;  %v322_v3 = vld [vmem:[%s1890_s14 + $0x4] sm:$0xf]  ;;  %v1811_v4 = vmov 0.0  }
  0x2b   : > { %1610 = vmatprep.subr.bf16.mxu0 %v1811_v4  ;;  %1616 = vmatprep.subr.bf16.mxu1 %v1811_v4  ;;  %v334_v5 = vsel %vm329_vm2, %v321_v2, 0  ;;  %v380_v6 = vsel %vm329_vm2, %v322_v3, 0  ;;  %vm1812_vm3 = vmmov 0   ;;  %v323_v7 = vld [vmem:[%s1890_s14 + $0x8] sm:$0xf]  ;;  %vm518_vm4 = vcmask 64512  }
  0x2c   : > { %1611 = vmatpush3.bf16.xpose.msra.mxu0 %v334_v5  ;;  %1617 = vmatpush3.bf16.xpose.msra.mxu1 %v380_v6  ;;  %v324_v8 = vld [vmem:[%s1890_s14 + $0xc] sm:$0xf]  ;;  %v317_v9 = vld [vmem:[%s1885_s10] sm:$0xf]  ;;  %v318_v10 = vld [vmem:[%s1885_s10 + $0x4] sm:$0xf] }
  0x2d   : > { %1612 = vmatprep.mubr.msk.bf16.mxu0 %vm1812_vm3, %v1811_v4  ;;  %1618 = vmatprep.mubr.msk.bf16.mxu1 %vm1812_vm3, %v1811_v4  ;;  %v426_v11 = vsel %vm329_vm2, %v323_v7, 0  ;;  %v472_v12 = vsel %vm329_vm2, %v324_v8, 0  ;;  %v319_v13 = vld [vmem:[%s1885_s10 + $0x8] sm:$0xf]  ;;  %v320_v14 = vld [vmem:[%s1885_s10 + $0xc] sm:$0xf] }
  0x2e   : > { %1622 = vmatprep.subr.bf16.mxu0 %v1811_v4  ;;  %1628 = vmatprep.subr.bf16.mxu1 %v1811_v4  ;;  %v1813_v33 = vmov 0   ;;  %v514_v36 = vld [vmem:[#allocation2] sm:$0xff]  ;;  %vm603_vm5 = vcmask 7168   ;;  %v1956_v39 = vld [vmem:[#allocation2 + $0x8] sm:$0xff]  ;;  %v516_v44 = vld [vmem:[#allocation2 + $0x10] sm:$0xff]  ;;  %vm643_vm6 = vcmask 1043456  }
  0x2f   : > { %1741 = vset.pattern.permute.xlu0 %v1813_v33  ;;  %1742 = vset.pattern.permute.xlu1 %v1813_v33  ;;  %v1967_v48 = vld [vmem:[#allocation2 + $0x18] sm:$0xff]  ;;  %v325_v52 = vld [vmem:[%s1895_s17] sm:$0xf]  ;;  %v326_v55 = vld [vmem:[%s1895_s17 + $0x4] sm:$0xf] }
  0x30   : > { %v645_v54 = vsel %vm643_vm6, %v325_v52, 0  ;;  %v691_v56 = vsel %vm643_vm6, %v326_v55, 0  ;;  %v327_v7 = vld [vmem:[%s1895_s17 + $0x8] sm:$0xf] }
  0x33   : > { %1613 = vmatmul.mubr.msk.bf16.vlgmr.msra.gmra.mxu0 %vm329_vm2, %v317_v9  ;;  %1619 = vmatmul.mubr.msk.bf16.vlgmr.msra.gmra.mxu1 %vm329_vm2, %v318_v10 }
  0x34   : > { %1623 = vmatpush3.bf16.xpose.msra.mxu0 %v426_v11  ;;  %1629 = vmatpush3.bf16.xpose.msra.mxu1 %v472_v12  ;;  %v737_v12 = vsel %vm643_vm6, %v327_v7, 0 }
  0x35   : > { %1624 = vmatprep.mubr.msk.bf16.mxu0 %vm1812_vm3, %v1811_v4  ;;  %1630 = vmatprep.mubr.msk.bf16.mxu1 %vm1812_vm3, %v1811_v4 }
  0x36   : > { %1634 = vmatprep.subr.bf16.mxu0 %v1811_v4  ;;  %1640 = vmatprep.subr.bf16.mxu1 %v1811_v4 }
  0x3b   : > { %1625 = vmatmul.mubr.msk.bf16.vlgmr.msra.gmra.mxu0 %vm329_vm2, %v319_v13  ;;  %1631 = vmatmul.mubr.msk.bf16.vlgmr.msra.gmra.mxu1 %vm329_vm2, %v320_v14  ;;  %v328_v13 = vld [vmem:[%s1895_s17 + $0xc] sm:$0xf] }
  0x3c   : > { %1636 = vmatprep.mubr.msk.bf16.mxu0 %vm1812_vm3, %v1811_v4  ;;  %1642 = vmatprep.mubr.msk.bf16.mxu1 %vm1812_vm3, %v1811_v4 }
  0x3d   : > { %1635 = vmatpush3.bf16.msra.mxu0 %v645_v54  ;;  %1641 = vmatpush3.bf16.msra.mxu1 %v691_v56  ;;  %v610_v54 = vld [vmem:[#allocation4 + $0x10] sm:$0xff] }
  0x3e   : > { %1646 = vmatprep.subr.bf16.mxu0 %v1811_v4  ;;  %1652 = vmatprep.subr.bf16.mxu1 %v1811_v4 }
  0xf3   : > { %v1940_v15 = vpop.f32.mrf.mxu0  ;;  %v1942_v16 = vpop.f32.mrf.mxu1 }
  0xf4   : > { %v519_v17 = vsel %vm518_vm4, %v1940_v15, -inf  ;;  %v522_v20 = vsel %vm518_vm4, %v1942_v16, -inf }
  0xf5   : > { %v1620_v18 = vpop.f32.mrf.mxu1  ;;  %520 = vmax.xlane.f32.xlu0 %v519_v17  ;;  %v1614_v19 = vpop.f32.mrf.mxu0  ;;  %v783_v17 = vsel %vm643_vm6, %v328_v13, 0 }
  0xf7   : > { %v373_v21 = vpop.f32.mrf.mxu0  ;;  %v419_v22 = vpop.f32.mrf.mxu1 }
  0xf9   : > { %v1621_v23 = vpop.f32.mrf.mxu1  ;;  %523 = vmax.xlane.f32.xlu0 %v522_v20  ;;  %v1615_v24 = vpop.f32.mrf.mxu0 }
  0xfb   : > { %v1948_v25 = vpop.f32.mrf.mxu0  ;;  %v1950_v26 = vpop.f32.mrf.mxu1 }
  0xfc   : > { %v525_v27 = vsel %vm518_vm4, %v1948_v25, -inf  ;;  %v528_v30 = vsel %vm518_vm4, %v1950_v26, -inf }
  0xfd   : > { %v1632_v28 = vpop.f32.mrf.mxu1  ;;  %526 = vmax.xlane.f32.xlu1 %v525_v27  ;;  %v1626_v29 = vpop.f32.mrf.mxu0 }
  0xfe   : > { %v579_v29 = vld [vmem:[#allocation3] sm:$0xff] }
  0xff   : > { %v465_v31 = vpop.f32.mrf.mxu0  ;;  %v511_v32 = vpop.f32.mrf.mxu1 }
 0x100   : > { %v580_v32 = vld [vmem:[#allocation3 + $0x8] sm:$0xff] }
 0x101   : > { %v1633_v34 = vpop.f32.mrf.mxu1  ;;  %529 = vmax.xlane.f32.xlu1 %v528_v30  ;;  %v1627_v35 = vpop.f32.mrf.mxu0 }
 0x17e   : > { %v521_v37 = vpop.xlane.xlu0 %520 }
 0x17f   : > { %v531_v38 = vmax.f32 %v514_v36, %v521_v37 }
 0x181   : > { %v535_v40 = vsub.f32 %v514_v36, %v531_v38  ;;  %833 = vst.msk [vmem:[#allocation2] sm:$0xff] %vm603_vm5, %v531_v38  ;;  %549 = vperm.xlu0 %1741, %v531_v38   ;;  %v581_v38 = vld [vmem:[#allocation3 + $0x10] sm:$0xff] }
 0x182   : > { %v524_v41 = vpop.xlane.xlu0 %523 }
 0x183   : > { %v539_v42 = vmul.f32 1.442695, %v535_v40  ;;  %v1960_v43 = vmax.f32 %v1956_v39, %v524_v41 }
 0x185   : > { %1743 = vpow2.f32 %v539_v42  ;;  %v536_v45 = vsub.f32 %v1956_v39, %v1960_v43  ;;  %834 = vst.msk [vmem:[#allocation2 + $0x8] sm:$0xff] %vm603_vm5, %v1960_v43  ;;  %554 = vperm.xlu1 %1742, %v1960_v43   ;;  %v608_v39 = vld [vmem:[#allocation4] sm:$0xff]  ;;  %v582_v42 = vld [vmem:[#allocation3 + $0x18] sm:$0xff] }
 0x186   : > { %v527_v46 = vpop.xlane.xlu1 %526 }
 0x187   : > { %v533_v47 = vmax.f32 %v516_v44, %v527_v46  ;;  %v541_v20 = vmul.f32 1.442695, %v536_v45  ;;  %v609_v45 = vld [vmem:[#allocation4 + $0x8] sm:$0xff] }
 0x189   : > { %v537_v49 = vsub.f32 %v516_v44, %v533_v47  ;;  %835 = vst.msk [vmem:[#allocation2 + $0x10] sm:$0xff] %vm603_vm5, %v533_v47  ;;  %559 = vperm.xlu1 %1742, %v533_v47  }
 0x18a   : > { %v530_v50 = vpop.xlane.xlu1 %529 }
 0x18b   : > { %v1971_v51 = vmax.f32 %v1967_v48, %v530_v50  ;;  %v543_v9 = vmul.f32 1.442695, %v537_v49 }
 0x18d   : > { %v538_v53 = vsub.f32 %v1967_v48, %v1971_v51  ;;  %836 = vst.msk [vmem:[#allocation2 + $0x18] sm:$0xff] %vm603_vm5, %v1971_v51  ;;  %564 = vperm.xlu1 %1742, %v1971_v51  }
 0x192   : > { %v1744_v57 = vpop.eup %1743 }
 0x193   : > { %614 = vperm.xlu1 %1742, %v1744_v57   ;;  %v583_v30 = vmul.f32 %v1744_v57, %v579_v29 }
 0x1fc   : > { %v550_v58 = vpop.permute.xlu0 %549 }
 0x1fd   : > { %v567_v59 = vsub.f32 %v1940_v15, %v550_v58 }
 0x1ff   : > { %v571_v60 = vmul.f32 1.442695, %v567_v59 }
 0x200   : > { %v555_v61 = vpop.permute.xlu1 %554 }
 0x201   : > { %1745 = vpow2.f32 %v571_v60  ;;  %v568_v62 = vsub.f32 %v1942_v16, %v555_v61 }
 0x203   : > { %v573_v63 = vmul.f32 1.442695, %v568_v62  ;;  %v611_v62 = vld [vmem:[#allocation4 + $0x18] sm:$0xff] }
 0x204   : > { %v560_v0 = vpop.permute.xlu1 %559 }
 0x205   : > { %1747 = vpow2.f32 %v573_v63  ;;  %v569_v1 = vsub.f32 %v1948_v25, %v560_v0 }
 0x207   : > { %v575_v2 = vmul.f32 1.442695, %v569_v1 }
 0x208   : > { %v565_v3 = vpop.permute.xlu1 %564 }
 0x209   : > { %1749 = vpow2.f32 %v575_v2  ;;  %v570_v5 = vsub.f32 %v1950_v26, %v565_v3 }
 0x20b   : > { %v577_v6 = vmul.f32 1.442695, %v570_v5 }
 0x20d   : > { %1751 = vpow2.f32 %v577_v6 }
 0x20e   : > { %v1746_v8 = vpop.eup %1745  ;;  %1753 = vpow2.f32 %v543_v9  ;;  %v615_v28 = vpop.permute.xlu1 %614 }
 0x20f   : > { %v587_v10 = vsel %vm518_vm4, %v1746_v8, 0.0  ;;  %v636_v11 = vpack.c.bf16 %v1746_v8, %v1746_v8  ;;  %1755 = vpow2.f32 %v541_v20  ;;  %v632_v44 = vmul.f32 %v615_v28, %v608_v39 }
 0x210   : > { %588 = vadd.xlane.f32.xlu1 %v587_v10 }
 0x211   : > { %1637 = vmatmul.mubr.msk.bf16.vlgmr.msra.gmra.mxu0 %vm518_vm4, %v636_v11 }
 0x212   : > { %v1748_v14 = vpop.eup %1747  ;;  %1647 = vmatpush3.bf16.msra.mxu0 %v737_v12  ;;  %1648 = vmatprep.mubr.msk.bf16.mxu0 %vm1812_vm3, %v1811_v4 }
 0x213   : > { %v590_v15 = vsel %vm518_vm4, %v1748_v14, 0.0  ;;  %v637_v16 = vpack.c.bf16 %v1748_v14, %v1748_v14 }
 0x214   : > { %591 = vadd.xlane.f32.xlu0 %v590_v15 }
 0x215   : > { %1643 = vmatmul.mubr.msk.bf16.vlgmr.msra.gmra.mxu1 %vm518_vm4, %v637_v16 }
 0x216   : > { %v1750_v18 = vpop.eup %1749  ;;  %1653 = vmatpush3.bf16.msra.mxu1 %v783_v17  ;;  %1654 = vmatprep.mubr.msk.bf16.mxu1 %vm1812_vm3, %v1811_v4  ;;  %v545_v4 = vmul.f32 1.442695, %v538_v53 }
 0x217   : > { %v638_v19 = vpack.c.bf16 %v1750_v18, %v1750_v18  ;;  %v593_v25 = vsel %vm518_vm4, %v1750_v18, 0.0 }
 0x218   : > { %1757 = vpow2.f32 %v545_v4 }
 0x219   : > { %1649 = vmatmul.mubr.msk.bf16.vlgmr.msra.gmra.mxu0 %vm518_vm4, %v638_v19 }
 0x21a   : > { %v1752_v21 = vpop.eup %1751 }
 0x21b   : > { %v639_v22 = vpack.c.bf16 %v1752_v21, %v1752_v21  ;;  %v1754_v23 = vpop.eup %1753  ;;  %v596_v26 = vsel %vm518_vm4, %v1752_v21, 0.0 }
 0x21c   : > { %v1756_v24 = vpop.eup %1755  ;;  %v585_v40 = vmul.f32 %v1754_v23, %v581_v38 }
 0x21d   : > { %1655 = vmatmul.mubr.msk.bf16.vlgmr.msra.gmra.mxu1 %vm518_vm4, %v639_v22  ;;  %v584_v34 = vmul.f32 %v1756_v24, %v580_v32 }
 0x221   : > { %624 = vperm.xlu1 %1742, %v1754_v23  }
 0x225   : > { %v1758_v27 = vpop.eup %1757 }
 0x226   : > { %v586_v48 = vmul.f32 %v1758_v27, %v582_v42 }
 0x22a   : > { %619 = vperm.xlu0 %1741, %v1756_v24  }
 0x245   : > { %594 = vadd.xlane.f32.xlu1 %v593_v25 }
 0x249   : > { %597 = vadd.xlane.f32.xlu1 %v596_v26 }
 0x25a   : > { %629 = vperm.xlu1 %1742, %v1758_v27  }
 0x299   : > { %v589_v31 = vpop.xlane.xlu1 %588 }
 0x29a   : > { %v599_v33 = vadd.f32 %v589_v31, %v583_v30 }
 0x29c   : > { %604 = vst.msk [vmem:[#allocation3] sm:$0xff] %vm603_vm5, %v599_v33 }
 0x29d   : > { %v592_v35 = vpop.xlane.xlu0 %591  ;;  %v625_v37 = vpop.permute.xlu1 %624 }
 0x29e   : > { %v600_v36 = vadd.f32 %v592_v35, %v584_v34  ;;  %v634_v60 = vmul.f32 %v625_v37, %v610_v54 }
 0x2a0   : > { %605 = vst.msk [vmem:[#allocation3 + $0x8] sm:$0xff] %vm603_vm5, %v600_v36 }
 0x2a5   : > { %v620_v46 = vpop.permute.xlu0 %619 }
 0x2a6   : > { %v633_v53 = vmul.f32 %v620_v46, %v609_v45 }
 0x2ce   : > { %v595_v41 = vpop.xlane.xlu1 %594 }
 0x2cf   : > { %v601_v43 = vadd.f32 %v595_v41, %v585_v40 }
 0x2d1   : > { %606 = vst.msk [vmem:[#allocation3 + $0x10] sm:$0xff] %vm603_vm5, %v601_v43  ;;  %v681_v47 = vpop.f32.mrf.mxu0 }
 0x2d2   : > { %v825_v49 = vadd.f32 %v681_v47, %v632_v44  ;;  %v598_v50 = vpop.xlane.xlu1 %597 }
 0x2d3   : > { %v602_v51 = vadd.f32 %v598_v50, %v586_v48  ;;  %v1638_v52 = vpop.f32.mrf.mxu0 }
 0x2d4   : > { %829 = vst.msk [vmem:[#allocation4] sm:$0xff] %vm329_vm2, %v825_v49 }
 0x2d5   : > { %607 = vst.msk [vmem:[#allocation3 + $0x18] sm:$0xff] %vm603_vm5, %v602_v51  ;;  %v684_v55 = vpop.f32.mrf.mxu0  ;;  %v727_v56 = vpop.f32.mrf.mxu1 }
 0x2d6   : > { %v826_v57 = vadd.f32 %v727_v56, %v633_v53  ;;  %v630_v61 = vpop.permute.xlu1 %629 }
 0x2d7   : > { %v1639_v58 = vpop.f32.mrf.mxu0  ;;  %v1644_v59 = vpop.f32.mrf.mxu1  ;;  %v635_v5 = vmul.f32 %v630_v61, %v611_v62 }
 0x2d8   : > { %830 = vst.msk [vmem:[#allocation4 + $0x8] sm:$0xff] %vm329_vm2, %v826_v57 }
 0x2d9   : > { %v730_v63 = vpop.f32.mrf.mxu1  ;;  %v773_v0 = vpop.f32.mrf.mxu0 }
 0x2da   : > { %v827_v1 = vadd.f32 %v773_v0, %v634_v60 }
 0x2db   : > { %v1645_v2 = vpop.f32.mrf.mxu1  ;;  %v1650_v3 = vpop.f32.mrf.mxu0 }
 0x2dc   : > { %831 = vst.msk [vmem:[#allocation4 + $0x10] sm:$0xff] %vm329_vm2, %v827_v1 }
 0x2dd   : > { %v776_v6 = vpop.f32.mrf.mxu0  ;;  %v819_v7 = vpop.f32.mrf.mxu1 }
 0x2de   : > { %v828_v8 = vadd.f32 %v819_v7, %v635_v5 }
 0x2df   : > { %v1651_v9 = vpop.f32.mrf.mxu0  ;;  %v1656_v10 = vpop.f32.mrf.mxu1 }
 0x2e0   : > { %832 = vst.msk [vmem:[#allocation4 + $0x18] sm:$0xff] %vm329_vm2, %v828_v8 }
 0x2e1   : > { %v822_v11 = vpop.f32.mrf.mxu1 }
 0x2e3   : > { %v1657_v12 = vpop.f32.mrf.mxu1 }
 0x2e4 PF: > { %p1567_p9 = scmp.ne.s32.totalorder %s1876_s25, %s1874_s1 }
 0x2e5   : > { %s1817_s22 = smov (!%p1567_p9), 16   ;;  %s1818_s1 = smov (!%p1567_p9), 32  }
 0x2e6   : > { %840 = sbr.rel (%p1567_p9) target bundleno = 1653 (0x675), region = 44  ;;  %s1819_s25 = smov (!%p1567_p9), 48  }
 0x2eb   : > { %v845_v13 = vld [vmem:[%s1890_s14] sm:$0xf]  ;;  %vm853_vm7 = vcmask 130048   ;;  %v846_v14 = vld [vmem:[%s1890_s14 + $0x4] sm:$0xf]  ;;  %v1814_v15 = vmov 0.0   ;;  %v1038_v4 = vlaneseq }
 0x2ec   : > { %1658 = vmatprep.subr.bf16.mxu0 %v1814_v15  ;;  %1664 = vmatprep.subr.bf16.mxu1 %v1814_v15  ;;  %v858_v16 = vsel %vm853_vm7, %v845_v13, 0  ;;  %v904_v17 = vsel %vm853_vm7, %v846_v14, 0  ;;  %vm1815_vm8 = vmmov 0   ;;  %v847_v18 = vld [vmem:[%s1890_s14 + $0x8] sm:$0xf]  ;;  %vm1053_vm10 = vcmask 64512  }
 0x2ed   : > { %1659 = vmatpush3.bf16.xpose.msra.mxu0 %v858_v16  ;;  %1665 = vmatpush3.bf16.xpose.msra.mxu1 %v904_v17  ;;  %v848_v19 = vld [vmem:[%s1890_s14 + $0xc] sm:$0xf]  ;;  %v841_v20 = vld [vmem:[%s1885_s10] sm:$0xf]  ;;  %v842_v21 = vld [vmem:[%s1885_s10 + $0x4] sm:$0xf] }
 0x2ee   : > { %1660 = vmatprep.mubr.msk.bf16.mxu0 %vm1815_vm8, %v1814_v15  ;;  %1666 = vmatprep.mubr.msk.bf16.mxu1 %vm1815_vm8, %v1814_v15  ;;  %v950_v22 = vsel %vm853_vm7, %v847_v18, 0  ;;  %v996_v23 = vsel %vm853_vm7, %v848_v19, 0  ;;  %v843_v24 = vld [vmem:[%s1885_s10 + $0x8] sm:$0xf]  ;;  %v844_v25 = vld [vmem:[%s1885_s10 + $0xc] sm:$0xf] }
 0x2ef   : > { %1670 = vmatprep.subr.bf16.mxu0 %v1814_v15  ;;  %1676 = vmatprep.subr.bf16.mxu1 %v1814_v15  ;;  %v1039_v26 = vshrl.u32 %v1038_v4, 7  ;;  %v1041_v27 = vand.u32 127, %v1038_v4  ;;  %v1816_v52 = vmov 0   ;;  %v2065_v53 = vld [vmem:[#allocation2] sm:$0xff]  ;;  %vm1138_vm11 = vcmask 7168   ;;  %v2070_v56 = vld [vmem:[#allocation2 + $0x8] sm:$0xff] }
 0x2f0   : > { %1759 = vset.pattern.permute.xlu0 %v1816_v52  ;;  %1760 = vset.pattern.permute.xlu1 %v1816_v52  ;;  %v2080_v60 = vld [vmem:[#allocation2 + $0x10] sm:$0xff]  ;;  %v2088_v0 = vld [vmem:[#allocation2 + $0x18] sm:$0xff]  ;;  %v849_v5 = vld [vmem:[%s1895_s17] sm:$0xf]  ;;  %vm1178_vm12 = vcmask 1043456   ;;  %vm1421_vm13 = vcmask 261120  }
 0x2f1   : > { %vm1042_vm9 = vcmp.ge.s32.totalorder %v1039_v26, %v1041_v27  ;;  %v1180_v7 = vsel %vm1178_vm12, %v849_v5, 0  ;;  %v850_v8 = vld [vmem:[%s1895_s17 + $0x4] sm:$0xf]  ;;  %v852_v26 = vld [vmem:[%s1895_s17 + $0xc] sm:$0xf]  ;;  %vm1423_vm14 = vcmask 392192  }
 0x2f2   : > { %v1226_v9 = vsel %vm1178_vm12, %v850_v8, 0  ;;  %vm1426_vm15 = vcmask 519168  }
 0x2f4   : > { %1661 = vmatmul.mubr.msk.bf16.vlgmr.msra.gmra.mxu0 %vm853_vm7, %v841_v20  ;;  %1667 = vmatmul.mubr.msk.bf16.vlgmr.msra.gmra.mxu1 %vm853_vm7, %v842_v21 }
 0x2f5   : > { %1671 = vmatpush3.bf16.xpose.msra.mxu0 %v950_v22  ;;  %1677 = vmatpush3.bf16.xpose.msra.mxu1 %v996_v23  ;;  %v851_v23 = vld [vmem:[%s1895_s17 + $0x8] sm:$0xf] }
 0x2f6   : > { %1672 = vmatprep.mubr.msk.bf16.mxu0 %vm1815_vm8, %v1814_v15  ;;  %1678 = vmatprep.mubr.msk.bf16.mxu1 %vm1815_vm8, %v1814_v15  ;;  %v1272_v4 = vsel %vm1178_vm12, %v851_v23, 0 }
 0x2f7   : > { %1682 = vmatprep.subr.bf16.mxu0 %v1814_v15  ;;  %1688 = vmatprep.subr.bf16.mxu1 %v1814_v15 }
 0x2fc   : > { %1673 = vmatmul.mubr.msk.bf16.vlgmr.msra.gmra.mxu0 %vm853_vm7, %v843_v24  ;;  %1679 = vmatmul.mubr.msk.bf16.vlgmr.msra.gmra.mxu1 %vm853_vm7, %v844_v25 }
 0x2fd   : > { %1684 = vmatprep.mubr.msk.bf16.mxu0 %vm1815_vm8, %v1814_v15  ;;  %1690 = vmatprep.mubr.msk.bf16.mxu1 %vm1815_vm8, %v1814_v15 }
 0x2fe   : > { %1683 = vmatpush3.bf16.msra.mxu0 %v1180_v7  ;;  %1689 = vmatpush3.bf16.msra.mxu1 %v1226_v9 }
 0x2ff   : > { %1694 = vmatprep.subr.bf16.mxu0 %v1814_v15  ;;  %1700 = vmatprep.subr.bf16.mxu1 %v1814_v15 }
 0x3b4   : > { %v894_v28 = vpop.f32.mrf.mxu0  ;;  %v940_v29 = vpop.f32.mrf.mxu1 }
 0x3b5   : > { %v2052_v30 = vsel %vm1042_vm9, %v894_v28, -inf  ;;  %v2055_v31 = vsel %vm1042_vm9, %v940_v29, -inf }
 0x3b6   : > { %v1662_v32 = vpop.f32.mrf.mxu0  ;;  %v1668_v33 = vpop.f32.mrf.mxu1  ;;  %v1054_v34 = vsel %vm1053_vm10, %v2052_v30, -inf  ;;  %v1057_v37 = vsel %vm1053_vm10, %v2055_v31, -inf }
 0x3b7   : > { %1055 = vmax.xlane.f32.xlu0 %v1054_v34 }
 0x3b8   : > { %v897_v35 = vpop.f32.mrf.mxu0  ;;  %v943_v36 = vpop.f32.mrf.mxu1 }
 0x3ba   : > { %v1663_v38 = vpop.f32.mrf.mxu0  ;;  %v1669_v39 = vpop.f32.mrf.mxu1 }
 0x3bb   : > { %1058 = vmax.xlane.f32.xlu0 %v1057_v37 }
 0x3bc   : > { %v986_v40 = vpop.f32.mrf.mxu0  ;;  %v1032_v41 = vpop.f32.mrf.mxu1 }
 0x3bd   : > { %v1047_v42 = vsel %vm1042_vm9, %v986_v40, -inf  ;;  %v1048_v43 = vsel %vm1042_vm9, %v1032_v41, -inf }
 0x3be   : > { %v1674_v44 = vpop.f32.mrf.mxu0  ;;  %v1680_v45 = vpop.f32.mrf.mxu1  ;;  %v1060_v46 = vsel %vm1053_vm10, %v1047_v42, -inf  ;;  %v1063_v49 = vsel %vm1053_vm10, %v1048_v43, -inf }
 0x3bf   : > { %1061 = vmax.xlane.f32.xlu1 %v1060_v46  ;;  %v1115_v44 = vld [vmem:[#allocation3 + $0x8] sm:$0xff] }
 0x3c0   : > { %v989_v47 = vpop.f32.mrf.mxu0  ;;  %v1035_v48 = vpop.f32.mrf.mxu1 }
 0x3c1   : > { %v1116_v47 = vld [vmem:[#allocation3 + $0x10] sm:$0xff] }
 0x3c2   : > { %v1675_v50 = vpop.f32.mrf.mxu0  ;;  %v1681_v51 = vpop.f32.mrf.mxu1 }
 0x3c3   : > { %1064 = vmax.xlane.f32.xlu1 %v1063_v49  ;;  %v1117_v51 = vld [vmem:[#allocation3 + $0x18] sm:$0xff] }
 0x440   : > { %v1056_v54 = vpop.xlane.xlu0 %1055 }
 0x441   : > { %v2068_v55 = vmax.f32 %v2065_v53, %v1056_v54 }
 0x443   : > { %v1070_v57 = vsub.f32 %v2065_v53, %v2068_v55  ;;  %1368 = vst.msk [vmem:[#allocation2] sm:$0xff] %vm1138_vm11, %v2068_v55  ;;  %1084 = vperm.xlu0 %1759, %v2068_v55  }
 0x444   : > { %v1059_v58 = vpop.xlane.xlu0 %1058 }
 0x445   : > { %v2078_v59 = vmax.f32 %v2070_v56, %v1059_v58 }
 0x447   : > { %v1071_v61 = vsub.f32 %v2070_v56, %v2078_v59  ;;  %1369 = vst.msk [vmem:[#allocation2 + $0x8] sm:$0xff] %vm1138_vm11, %v2078_v59  ;;  %1089 = vperm.xlu1 %1760, %v2078_v59   ;;  %v1114_v59 = vld [vmem:[#allocation3] sm:$0xff] }
 0x448   : > { %v1062_v62 = vpop.xlane.xlu1 %1061 }
 0x449   : > { %v1068_v63 = vmax.f32 %v2080_v60, %v1062_v62  ;;  %v1076_v38 = vmul.f32 1.442695, %v1071_v61 }
 0x44b   : > { %v1072_v1 = vsub.f32 %v2080_v60, %v1068_v63  ;;  %1370 = vst.msk [vmem:[#allocation2 + $0x10] sm:$0xff] %vm1138_vm11, %v1068_v63  ;;  %1094 = vperm.xlu1 %1760, %v1068_v63  }
 0x44c   : > { %v1065_v2 = vpop.xlane.xlu1 %1064 }
 0x44d   : > { %v1069_v3 = vmax.f32 %v2088_v0, %v1065_v2  ;;  %v1078_v37 = vmul.f32 1.442695, %v1072_v1 }
 0x44f   : > { %v1073_v6 = vsub.f32 %v2088_v0, %v1069_v3  ;;  %1371 = vst.msk [vmem:[#allocation2 + $0x18] sm:$0xff] %vm1138_vm11, %v1069_v3  ;;  %1099 = vperm.xlu1 %1760, %v1069_v3  }
 0x451   : > { %v1080_v39 = vmul.f32 1.442695, %v1073_v6  ;;  %v1144_v6 = vld [vmem:[#allocation4 + $0x8] sm:$0xff] }
 0x4be   : > { %v1085_v10 = vpop.permute.xlu0 %1084 }
 0x4bf   : > { %v1102_v11 = vsub.f32 %v2052_v30, %v1085_v10  ;;  %v1318_v30 = vsel %vm1178_vm12, %v852_v26, 0 }
 0x4c1   : > { %v1106_v12 = vmul.f32 1.442695, %v1102_v11 }
 0x4c2   : > { %v1090_v13 = vpop.permute.xlu1 %1089 }
 0x4c3   : > { %1761 = vpow2.f32 %v1106_v12  ;;  %v1103_v14 = vsub.f32 %v2055_v31, %v1090_v13  ;;  %v1145_v12 = vld [vmem:[#allocation4 + $0x10] sm:$0xff] }
 0x4c5   : > { %v1108_v16 = vmul.f32 1.442695, %v1103_v14 }
 0x4c6   : > { %v1095_v17 = vpop.permute.xlu1 %1094 }
 0x4c7   : > { %1763 = vpow2.f32 %v1108_v16  ;;  %v1104_v18 = vsub.f32 %v1047_v42, %v1095_v17 }
 0x4c9   : > { %v1110_v19 = vmul.f32 1.442695, %v1104_v18 }
 0x4ca   : > { %v1100_v20 = vpop.permute.xlu1 %1099 }
 0x4cb   : > { %1765 = vpow2.f32 %v1110_v19  ;;  %v1105_v21 = vsub.f32 %v1048_v43, %v1100_v20  ;;  %v1074_v43 = vmul.f32 1.442695, %v1070_v57 }
 0x4cd   : > { %v1112_v22 = vmul.f32 1.442695, %v1105_v21  ;;  %v1146_v21 = vld [vmem:[#allocation4 + $0x18] sm:$0xff] }
 0x4cf   : > { %1767 = vpow2.f32 %v1112_v22 }
 0x4d0   : > { %v1762_v24 = vpop.eup %1761  ;;  %1769 = vpow2.f32 %v1078_v37 }
 0x4d1   : > { %v1171_v25 = vpack.c.bf16 %v1762_v24, %v1762_v24  ;;  %1771 = vpow2.f32 %v1076_v38 }
 0x4d2   : > { %1773 = vpow2.f32 %v1080_v39  ;;  %v1143_v39 = vld [vmem:[#allocation4] sm:$0xff] }
 0x4d3   : > { %1685 = vmatmul.mubr.msk.bf16.vlgmr.msra.gmra.mxu0 %vm1053_vm10, %v1171_v25  ;;  %1775 = vpow2.f32 %v1074_v43 }
 0x4d4   : > { %v1764_v27 = vpop.eup %1763  ;;  %1695 = vmatpush3.bf16.msra.mxu0 %v1272_v4  ;;  %1696 = vmatprep.mubr.msk.bf16.mxu0 %vm1815_vm8, %v1814_v15 }
 0x4d5   : > { %v1125_v28 = vsel %vm1053_vm10, %v1764_v27, 0.0  ;;  %v1172_v29 = vpack.c.bf16 %v1764_v27, %v1764_v27 }
 0x4d6   : > { %1126 = vadd.xlane.f32.xlu1 %v1125_v28 }
 0x4d7   : > { %1691 = vmatmul.mubr.msk.bf16.vlgmr.msra.gmra.mxu1 %vm1053_vm10, %v1172_v29 }
 0x4d8   : > { %v1766_v31 = vpop.eup %1765  ;;  %1701 = vmatpush3.bf16.msra.mxu1 %v1318_v30  ;;  %1702 = vmatprep.mubr.msk.bf16.mxu1 %vm1815_vm8, %v1814_v15  ;;  %v1122_v15 = vsel %vm1053_vm10, %v1762_v24, 0.0 }
 0x4d9   : > { %v1128_v32 = vsel %vm1053_vm10, %v1766_v31, 0.0  ;;  %v1173_v33 = vpack.c.bf16 %v1766_v31, %v1766_v31 }
 0x4da   : > { %1129 = vadd.xlane.f32.xlu0 %v1128_v32 }
 0x4db   : > { %1697 = vmatmul.mubr.msk.bf16.vlgmr.msra.gmra.mxu0 %vm1053_vm10, %v1173_v33 }
 0x4dc   : > { %v1768_v34 = vpop.eup %1767 }
 0x4dd   : > { %v1131_v35 = vsel %vm1053_vm10, %v1768_v34, 0.0  ;;  %v1174_v36 = vpack.c.bf16 %v1768_v34, %v1768_v34  ;;  %v1770_v40 = vpop.eup %1769 }
 0x4de   : > { %1132 = vadd.xlane.f32.xlu1 %v1131_v35  ;;  %v1772_v41 = vpop.eup %1771  ;;  %v1120_v49 = vmul.f32 %v1770_v40, %v1116_v47 }
 0x4df   : > { %1703 = vmatmul.mubr.msk.bf16.vlgmr.msra.gmra.mxu1 %vm1053_vm10, %v1174_v36  ;;  %v1774_v42 = vpop.eup %1773  ;;  %v1119_v45 = vmul.f32 %v1772_v41, %v1115_v44 }
 0x4e0   : > { %v1121_v54 = vmul.f32 %v1774_v42, %v1117_v51  ;;  %v1776_v56 = vpop.eup %1775 }
 0x4e1   : > { %v1118_v57 = vmul.f32 %v1776_v56, %v1114_v59 }
 0x4e2   : > { %1123 = vadd.xlane.f32.xlu1 %v1122_v15 }
 0x4f0   : > { %1159 = vperm.xlu0 %1759, %v1770_v40  }
 0x4f3   : > { %1154 = vperm.xlu1 %1760, %v1772_v41  }
 0x4f7   : > { %1164 = vperm.xlu1 %1760, %v1774_v42  }
 0x55f   : > { %v1127_v46 = vpop.xlane.xlu1 %1126 }
 0x560   : > { %v1135_v48 = vadd.f32 %v1127_v46, %v1119_v45 }
 0x562   : > { %1140 = vst.msk [vmem:[#allocation3 + $0x8] sm:$0xff] %vm1138_vm11, %v1135_v48 }
 0x563   : > { %v1130_v50 = vpop.xlane.xlu0 %1129 }
 0x564   : > { %v1136_v52 = vadd.f32 %v1130_v50, %v1120_v49 }
 0x566   : > { %1141 = vst.msk [vmem:[#allocation3 + $0x10] sm:$0xff] %vm1138_vm11, %v1136_v52 }
 0x567   : > { %v1133_v58 = vpop.xlane.xlu1 %1132 }
 0x568   : > { %v1137_v53 = vadd.f32 %v1133_v58, %v1121_v54 }
 0x569   : > { %v1373_v55 = vld [vmem:[#allocation3 + $0x8] sm:$0xff] }
 0x56a   : > { %1142 = vst.msk [vmem:[#allocation3 + $0x18] sm:$0xff] %vm1138_vm11, %v1137_v53  ;;  %1777 = vrcp.f32 %v1373_v55 }
 0x56b   : > { %v1124_v60 = vpop.xlane.xlu1 %1123  ;;  %v1160_v10 = vpop.permute.xlu0 %1159 }
 0x56c   : > { %v1134_v61 = vadd.f32 %v1124_v60, %v1118_v57  ;;  %v1169_v19 = vmul.f32 %v1160_v10, %v1145_v12 }
 0x56d   : > { %v1374_v62 = vld [vmem:[#allocation3 + $0x10] sm:$0xff] }
 0x56e   : > { %1139 = vst.msk [vmem:[#allocation3] sm:$0xff] %vm1138_vm11, %v1134_v61  ;;  %1779 = vrcp.f32 %v1374_v62 }
 0x56f   : > { %v1155_v7 = vpop.permute.xlu1 %1154 }
 0x570   : > { %v1168_v11 = vmul.f32 %v1155_v7, %v1144_v6 }
 0x571   : > { %v1375_v63 = vld [vmem:[#allocation3 + $0x18] sm:$0xff] }
 0x572   : > { %1781 = vrcp.f32 %v1375_v63 }
 0x573   : > { %v1165_v20 = vpop.permute.xlu1 %1164 }
 0x574   : > { %v1170_v26 = vmul.f32 %v1165_v20, %v1146_v21 }
 0x575   : > { %v1372_v0 = vld [vmem:[#allocation3] sm:$0xff] }
 0x576   : > { %1783 = vrcp.f32 %v1372_v0 }
 0x577   : > { %v1778_v1 = vpop.eup %1777 }
 0x578   : > { %1391 = vperm.xlu1 %1760, %v1778_v1  }
 0x57b   : > { %v1780_v2 = vpop.eup %1779 }
 0x57c   : > { %1396 = vperm.xlu1 %1760, %v1780_v2  }
 0x57f   : > { %v1782_v3 = vpop.eup %1781 }
 0x580   : > { %1149 = vperm.xlu1 %1760, %v1776_v56   ;;  %1401 = vperm.xlu0 %1759, %v1782_v3  }
 0x583   : > { %v1784_v5 = vpop.eup %1783 }
 0x584   : > { %1386 = vperm.xlu0 %1759, %v1784_v5  }
 0x593   : > { %v1216_v8 = vpop.f32.mrf.mxu0 }
 0x595   : > { %v1686_v9 = vpop.f32.mrf.mxu0 }
 0x597   : > { %v1219_v13 = vpop.f32.mrf.mxu0  ;;  %v1262_v14 = vpop.f32.mrf.mxu1 }
 0x598   : > { %v1361_v16 = vadd.f32 %v1262_v14, %v1168_v11 }
 0x599   : > { %v1687_v17 = vpop.f32.mrf.mxu0  ;;  %v1692_v18 = vpop.f32.mrf.mxu1 }
 0x59a   : > { %1365 = vst.msk [vmem:[#allocation4 + $0x8] sm:$0xff] %vm853_vm7, %v1361_v16 }
 0x59b   : > { %v1265_v22 = vpop.f32.mrf.mxu1  ;;  %v1308_v23 = vpop.f32.mrf.mxu0 }
 0x59c   : > { %v1362_v24 = vadd.f32 %v1308_v23, %v1169_v19 }
 0x59d   : > { %v1693_v25 = vpop.f32.mrf.mxu1  ;;  %v1698_v4 = vpop.f32.mrf.mxu0 }
 0x59e   : > { %1366 = vst.msk [vmem:[#allocation4 + $0x10] sm:$0xff] %vm853_vm7, %v1362_v24 }
 0x59f   : > { %v1311_v27 = vpop.f32.mrf.mxu0  ;;  %v1354_v28 = vpop.f32.mrf.mxu1 }
 0x5a0   : > { %v1363_v29 = vadd.f32 %v1354_v28, %v1170_v26 }
 0x5a1   : > { %v1699_v30 = vpop.f32.mrf.mxu0  ;;  %v1704_v31 = vpop.f32.mrf.mxu1  ;;  %v1381_v34 = vld [vmem:[#allocation4 + $0x8] sm:$0xff] }
 0x5a2   : > { %1367 = vst.msk [vmem:[#allocation4 + $0x18] sm:$0xff] %vm853_vm7, %v1363_v29 }
 0x5a3   : > { %v1357_v32 = vpop.f32.mrf.mxu1 }
 0x5a5   : > { %v1705_v33 = vpop.f32.mrf.mxu1  ;;  %v1382_v38 = vld [vmem:[#allocation4 + $0x10] sm:$0xff] }
 0x5a9   : > { %v1383_v41 = vld [vmem:[#allocation4 + $0x18] sm:$0xff] }
 0x5f3   : > { %v1392_v35 = vpop.permute.xlu1 %1391 }
 0x5f4   : > { %v1405_v36 = vmul.f32 %v1392_v35, %v1381_v34 }
 0x5f6   : > { %1409 = vrot.lane.b32.xlu1 %v1405_v36, %s1817_s22 }
 0x5f7   : > { %v1397_v37 = vpop.permute.xlu1 %1396 }
 0x5f8   : > { %v1406_v15 = vmul.f32 %v1397_v37, %v1382_v38 }
 0x5fa   : > { %1413 = vrot.lane.b32.xlu0 %v1406_v15, %s1818_s1 }
 0x5fb   : > { %v1402_v40 = vpop.permute.xlu0 %1401  ;;  %v1150_v42 = vpop.permute.xlu1 %1149 }
 0x5fc   : > { %v1407_v43 = vmul.f32 %v1402_v40, %v1383_v41  ;;  %v1167_v44 = vmul.f32 %v1150_v42, %v1143_v39 }
 0x5fe   : > { %v1360_v45 = vadd.f32 %v1216_v8, %v1167_v44  ;;  %1417 = vrot.lane.b32.xlu1 %v1407_v43, %s1819_s25 }
 0x5ff   : > { %v1387_v46 = vpop.permute.xlu0 %1386 }
 0x600   : > { %1364 = vst.msk [vmem:[#allocation4] sm:$0xff] %vm853_vm7, %v1360_v45 }
 0x607   : > { %v1380_v47 = vld [vmem:[#allocation4] sm:$0xff] }
 0x608   : > { %v1404_v49 = vmul.f32 %v1387_v46, %v1380_v47 }
 0x668   : > { %v1410_v48 = vpop.permute.xlu1 %1409 }
 0x669   : > { %v1420_v51 = vsel %vm853_vm7, %v1404_v49, %v1410_v48 }
 0x66c   : > { %v1414_v50 = vpop.permute.xlu0 %1413 }
 0x66d   : > { %v1422_v52 = vsel %vm1421_vm13, %v1420_v51, %v1414_v50 }
 0x670   : > { %v1418_v54 = vpop.permute.xlu1 %1417 }
 0x671   : > { %v1424_v56 = vsel %vm1423_vm14, %v1422_v52, %v1418_v54 }
 0x672   : > { %v1425_v58 = vpack.c.bf16 %v1424_v56, %v1424_v56 }
 0x674   : > { %1427 = vst.msk [vmem:[%s290_s21] sm:$0xf] %vm1426_vm15, %v1425_v58 }
 0x675 PF: > { %s17_s24 = sadd.s32 1, %s1807_s24   ;;  %s2154_s22 = smov %s1803_s23 }
 0x676   : > { %p14_p10 = scmp.ge.s32.totalorder %s17_s24, 4   ;;  %s2155_s23 = smov %s2157_s0 }
 0x678   :  { %16 = sbr.rel (!%p14_p10) target bundleno = 3 (0x3), region = 80 }

</bundles_post_ra>
